<compile_context>
chip_gen: v7x
topology: tpu7x:2x2x1
jax: 0.10.0
libtpu: 0.0.40
codegen_flags: <defaults>
</compile_context>

<pallas_src>
import functools

import jax
import jax.numpy as jnp
from jax.experimental import pallas as pl
from jax.experimental.pallas import tpu as pltpu


def _round_up(x, m):
    return ((x + m - 1) // m) * m


def _cdiv(a, b):
    return -(-a // b)


def _make_deep_kernel(n_hidden):
    """Kernel for n_hidden (Linear+bias+Sigmoid) layers + one bias-free Linear."""

    def kernel(*refs):
        x_ref = refs[0]
        o_ref = refs[-1]
        p = refs[1:-1]  # (w1, b1, w2, b2, ..., wn, bn, w_out), pre-transposed [in, out]

        h = x_ref[...]
        for i in range(n_hidden):
            w_ref = p[2 * i]
            b_ref = p[2 * i + 1]
            z = jnp.dot(h.astype(w_ref.dtype), w_ref[...],
                        preferred_element_type=jnp.float32)
            z = z + b_ref[...].astype(jnp.float32)
            # sigmoid(z) == 0.5 * tanh(0.5 * z) + 0.5 : single EUP op (tanh);
            # the mul/add run on the VALU.  Exact (no approx reciprocal).
            h = 0.5 * jnp.tanh(0.5 * z) + 0.5

        w_out_ref = p[-1]
        out = jnp.dot(h.astype(w_out_ref.dtype), w_out_ref[...],
                      preferred_element_type=jnp.float32)
        o_ref[...] = out.astype(o_ref.dtype)

    return kernel


@functools.partial(jax.jit, static_argnames=("tile_b", "single_buffer_weights"))
def deep_ext_pallas(x, params, *, tile_b, single_buffer_weights):
    """x: [Bp, Fp] (Bp % tile_b == 0, Fp % 128 == 0); params already lane-dense
    padded (w1, b1, ..., wn, bn, w_out).  Returns [Bp, Op] f32."""
    Bp, Fp = x.shape
    n_hidden = (len(params) - 1) // 2
    Hp = params[0].shape[1]
    Op = params[-1].shape[1]
    grid = (Bp // tile_b,)

    in_specs = [pl.BlockSpec((tile_b, Fp), lambda i: (i, 0))]
    for prm in params:
        if single_buffer_weights:
            # Grid-invariant block (constant index_map): fetched once; single
            # buffering halves its VMEM residency (matters on v7x's 64 MiB).
            spec = pl.BlockSpec(prm.shape, lambda i: (0, 0),
                                pipeline_mode=pl.Buffered(1))
        else:
            spec = pl.BlockSpec(prm.shape, lambda i: (0, 0))
        in_specs.append(spec)

    # Explicit VMEM limit: resident weights + double-buffered x/out tiles +
    # headroom for the per-layer activation temps (h, z in f32).
    x_item = x.dtype.itemsize
    w_bytes = sum(int(p.size) * p.dtype.itemsize for p in params)
    w_bufs = 1 if single_buffer_weights else 2
    vmem_need = (w_bufs * w_bytes
                 + 2 * tile_b * Fp * x_item
                 + 2 * tile_b * Op * 4
                 + 6 * tile_b * Hp * 4)
    vmem_limit = int(min(64 << 20, max(32 << 20, 2 * vmem_need)))

    flops = 2 * Bp * (Fp * Hp + max(n_hidden - 1, 0) * Hp * Hp + Hp * Op)
    transcendentals = Bp * Hp * n_hidden          # one tanh per hidden activation
    bytes_accessed = x_item * Bp * Fp + 4 * Bp * Op + w_bytes

    return pl.pallas_call(
        _make_deep_kernel(n_hidden),
        out_shape=jax.ShapeDtypeStruct((Bp, Op), jnp.float32),
        grid_spec=pltpu.PrefetchScalarGridSpec(
            num_scalar_prefetch=0,
            grid=grid,
            in_specs=in_specs,
            out_specs=pl.BlockSpec((tile_b, Op), lambda i: (i, 0)),
        ),
        compiler_params=pltpu.CompilerParams(
            dimension_semantics=("parallel",),
            vmem_limit_bytes=vmem_limit),
        cost_estimate=pl.CostEstimate(
            flops=int(flops),
            transcendentals=int(transcendentals),
            bytes_accessed=int(bytes_accessed)),
    )(x, *params)


class DeepExtPallas:
    """JAX/Pallas port of Deep_ext.

    addiction_features: optional list of JAX callables f(x) -> [B] per-row scalars,
    stacked along the last axis and hstacked onto x (glue in plain JAX; the deep
    Linear/Sigmoid chain runs inside the Pallas kernel).
    """

    def __init__(self, in_dim, h_dim, out_dim, layers=4, addiction_features=None,
                 key=None, compute_dtype=jnp.bfloat16, min_pallas_rows=0):
        self.in_dim = in_dim
        self.h_dim = h_dim
        self.out_dim = out_dim
        self.compute_dtype = compute_dtype
        self.min_pallas_rows = min_pallas_rows
        self.with_af = addiction_features is not None
        self.afs = list(addiction_features) if addiction_features is not None else []
        self.eff_in = in_dim + len(self.afs)
        self._single_buffer_ok = None   # probed on first Pallas call

        if key is None:
            key = jax.random.PRNGKey(0)
        dims = [self.eff_in] + [h_dim] * layers + [out_dim]
        keys = jax.random.split(key, 2 * len(dims))

        # nn.Linear-style uniform(-1/sqrt(fan_in), 1/sqrt(fan_in)) init; stored
        # transposed [fan_in, fan_out] so the kernel does row-major matmuls.
        self.hidden = []          # [(w_t, b), ...] for the Linear+Sigmoid layers
        ki = 0
        for i in range(1, len(dims)):
            fan_in, fan_out = dims[i - 1], dims[i]
            lim = 1.0 / (fan_in ** 0.5)
            last = (i == len(dims) - 1)
            w_t = jax.random.uniform(keys[ki], (fan_in, fan_out), jnp.float32, -lim, lim)
            ki += 1
            if last:
                self.w_out_t = w_t   # final Linear, bias=False
            else:
                b = jax.random.uniform(keys[ki], (1, fan_out), jnp.float32, -lim, lim)
                ki += 1
                self.hidden.append((w_t, b))

        # Lane-dense padded copies for the kernel.  Padded weight rows/cols are
        # ZERO: this is what cancels sigmoid(0)=0.5 on padded hidden lanes, so
        # padding must never become non-zero (see module NOTE).
        Fp = _round_up(self.eff_in, 128)
        Hp = _round_up(h_dim, 128)
        Op = _round_up(out_dim, 128)
        self.Fp, self.Hp, self.Op = Fp, Hp, Op

        padded = []
        for li, (w_t, b) in enumerate(self.hidden):
            in_p = Fp if li == 0 else Hp
            wp = jnp.zeros((in_p, Hp), compute_dtype)
            wp = wp.at[:w_t.shape[0], :w_t.shape[1]].set(w_t.astype(compute_dtype))
            bp = jnp.zeros((1, Hp), jnp.float32)          # bias kept f32 (tiny)
            bp = bp.at[:, :b.shape[1]].set(b)
            padded += [wp, bp]
        wop = jnp.zeros((Hp, Op), compute_dtype)
        wop = wop.at[:h_dim, :out_dim].set(self.w_out_t.astype(compute_dtype))
        padded.append(wop)
        self.padded_params = tuple(padded)

    # ------------------------------------------------------------------ helpers
    def _maybe_augment(self, x):
        if self.with_af and x.shape[-1] == self.in_dim:
            phi = jnp.stack([af(x) for af in self.afs], axis=x.ndim - 1)
            x = jnp.concatenate([x, phi], axis=-1)   # torch.hstack for 2-D inputs
        return x

    def _forward_dense(self, xa):
        h = xa
        for w_t, b in self.hidden:
            h = jax.nn.sigmoid(h @ w_t + b)
        return h @ self.w_out_t

    def _choose_tiling(self, B):
        # VMEM-aware batch tile: weights + 2x x-tile + 2x out-tile + activation
        # temps must fit under a conservative ~48 MiB (v7x has 64 MiB per TC).
        w_bytes = sum(int(p.size) * p.dtype.itemsize for p in self.padded_params)
        per_row = (2 * self.Fp * jnp.dtype(self.compute_dtype).itemsize
                   + 2 * self.Op * 4
                   + 6 * self.Hp * 4)
        budget = max((48 << 20) - w_bytes, 1 << 20)
        max_tile = max(8, min(512, (budget // per_row) // 8 * 8))
        # Keep >= 2 grid steps for decent batches so the "parallel" batch axis can
        # shard across both TensorCores on v7x, and size the tile from the batch
        # itself so tail padding stays under one sublane group.
        n_steps = max(_cdiv(B, max_tile), 2 if B >= 256 else 1)
        tile_b = max(8, _round_up(_cdiv(B, n_steps), 8))
        tile_b = min(tile_b, max_tile)
        Bp = _round_up(B, tile_b)
        return tile_b, Bp

    def _run_pallas(self, xp, tile_b):
        if self._single_buffer_ok is None:
            try:
                out = deep_ext_pallas(xp, self.padded_params, tile_b=tile_b,
                                      single_buffer_weights=True)
                jax.block_until_ready(out)
                self._single_buffer_ok = True
                return out
            except Exception:
                # Fallback for jax versions that reject Buffered(1) on a BlockSpec.
                self._single_buffer_ok = False
        return deep_ext_pallas(xp, self.padded_params, tile_b=tile_b,
                               single_buffer_weights=self._single_buffer_ok)

    # ------------------------------------------------------------------ forward
    def __call__(self, x):
        x = self._maybe_augment(x)
        B = x.shape[0]

        if B < self.min_pallas_rows:
            # Tiny problems: a fused XLA dot chain beats any Pallas tiling.
            return self._forward_dense(x)

        tile_b, Bp = self._choose_tiling(B)
        xc = x.astype(self.compute_dtype)
        pad_rows = Bp - B
        pad_cols = self.Fp - self.eff_in
        if pad_rows or pad_cols:
            # Pad only the needed edges; skipped entirely for aligned shapes to
            # avoid a second full copy of the input in HBM.
            xp = jnp.pad(xc, ((0, pad_rows), (0, pad_cols)))
        else:
            xp = xc

        out = self._run_pallas(xp, tile_b)
        if Bp != B or self.Op != self.out_dim:
            out = out[:B, :self.out_dim]
        return out

    def reference(self, x):
        return self._forward_dense(self._maybe_augment(x))


if __name__ == "__main__":
    key = jax.random.PRNGKey(0)
    kx, kp, kp2, kp3 = jax.random.split(key, 4)

    B, in_dim, h_dim, out_dim, layers = 8, 16, 32, 8, 4
    x = jax.random.normal(kx, (B, in_dim), jnp.float32)

    # Case 1: default bf16 compute path, no addiction features.
    model = DeepExtPallas(in_dim, h_dim, out_dim, layers=layers, key=kp)
    out = jax.block_until_ready(model(x))
    ref = model.reference(x)
    assert out.shape == (B, out_dim)
    assert jnp.allclose(out, ref, atol=3e-2, rtol=3e-2), float(jnp.max(jnp.abs(out - ref)))

    # Case 2: bf16 with addiction features (row-wise sum and mean).
    afs = [lambda t: jnp.sum(t, axis=-1), lambda t: jnp.mean(t, axis=-1)]
    model_af = DeepExtPallas(in_dim, h_dim, out_dim, layers=layers,
                             addiction_features=afs, key=kp2)
    out_af = jax.block_until_ready(model_af(x))
    ref_af = model_af.reference(x)
    assert out_af.shape == (B, out_dim)
    assert jnp.allclose(out_af, ref_af, atol=3e-2, rtol=3e-2)

    # Case 3: f32 compute path, larger batch -> adaptive 512-row tile, >=2-step
    # "parallel" grid (shards across both TensorCores on v7x), tight numerics.
    model_f32 = DeepExtPallas(in_dim, h_dim, out_dim, layers=layers, key=kp3,
                              compute_dtype=jnp.float32)
    B2 = 1024
    x2 = jax.random.normal(kx, (B2, in_dim), jnp.float32)
    out2 = jax.block_until_ready(model_f32(x2))
    ref2 = model_f32.reference(x2)
    assert out2.shape == (B2, out_dim)
    assert jnp.allclose(out2, ref2, atol=2e-2, rtol=2e-2)

    # Case 4: ragged batch (exercises tail-aware tile choice, B=264 -> ~272 rows
    # padded, not 512).
    B3 = 264
    x3 = jax.random.normal(kx, (B3, in_dim), jnp.float32)
    out3 = jax.block_until_ready(model_f32(x3))
    ref3 = model_f32.reference(x3)
    assert out3.shape == (B3, out_dim)
    assert jnp.allclose(out3, ref3, atol=2e-2, rtol=2e-2)

    print("KERNEL_OK")
</pallas_src>

<mosaic_0001>
module attributes {stable_mosaic.version = 11 : i64} {
  func.func @kernel(%arg0: i32, %arg1: memref<8x128xbf16, #tpu.memory_space<vmem>>, %arg2: memref<128x128xbf16, #tpu.memory_space<vmem>>, %arg3: memref<1x128xf32, #tpu.memory_space<vmem>>, %arg4: memref<128x128xbf16, #tpu.memory_space<vmem>>, %arg5: memref<1x128xf32, #tpu.memory_space<vmem>>, %arg6: memref<128x128xbf16, #tpu.memory_space<vmem>>, %arg7: memref<1x128xf32, #tpu.memory_space<vmem>>, %arg8: memref<128x128xbf16, #tpu.memory_space<vmem>>, %arg9: memref<1x128xf32, #tpu.memory_space<vmem>>, %arg10: memref<128x128xbf16, #tpu.memory_space<vmem>>, %arg11: memref<8x128xf32, #tpu.memory_space<vmem>>) attributes {dimension_semantics = [#tpu.dimension_semantics<parallel>], iteration_bounds = array<i64: 1>, scalar_prefetch = 0 : i64, scratch_operands = 0 : i64, tpu.core_type = #tpu.core_type<tc>, window_params = [{transform_indices = @transform_0, window_bounds = array<i64: 8, 128>}, {pipeline_mode = #tpu.pipeline_mode<synchronous>, transform_indices = @transform_1, window_bounds = array<i64: 128, 128>}, {pipeline_mode = #tpu.pipeline_mode<synchronous>, transform_indices = @transform_2, window_bounds = array<i64: 1, 128>}, {pipeline_mode = #tpu.pipeline_mode<synchronous>, transform_indices = @transform_3, window_bounds = array<i64: 128, 128>}, {pipeline_mode = #tpu.pipeline_mode<synchronous>, transform_indices = @transform_4, window_bounds = array<i64: 1, 128>}, {pipeline_mode = #tpu.pipeline_mode<synchronous>, transform_indices = @transform_5, window_bounds = array<i64: 128, 128>}, {pipeline_mode = #tpu.pipeline_mode<synchronous>, transform_indices = @transform_6, window_bounds = array<i64: 1, 128>}, {pipeline_mode = #tpu.pipeline_mode<synchronous>, transform_indices = @transform_7, window_bounds = array<i64: 128, 128>}, {pipeline_mode = #tpu.pipeline_mode<synchronous>, transform_indices = @transform_8, window_bounds = array<i64: 1, 128>}, {pipeline_mode = #tpu.pipeline_mode<synchronous>, transform_indices = @transform_9, window_bounds = array<i64: 128, 128>}, {transform_indices = @transform_10, window_bounds = array<i64: 8, 128>}]} {
    %c0 = arith.constant 0 : index
    %c0_0 = arith.constant 0 : index
    %0 = vector.load %arg1[%c0, %c0_0] : memref<8x128xbf16, #tpu.memory_space<vmem>>, vector<8x128xbf16>
    %c0_1 = arith.constant 0 : index
    %c0_2 = arith.constant 0 : index
    %1 = vector.load %arg2[%c0_1, %c0_2] : memref<128x128xbf16, #tpu.memory_space<vmem>>, vector<128x128xbf16>
    %cst = arith.constant dense<0.000000e+00> : vector<8x128xf32>
    %2 = tpu.matmul %0, %1, %cst {dimension_numbers = #tpu.dot_dimension_numbers<[1], [0], [0], [1], [0, 0, 1, 1], [], []>} : vector<8x128xbf16>, vector<128x128xbf16>, vector<8x128xf32> -> vector<8x128xf32>
    %c0_3 = arith.constant 0 : index
    %c0_4 = arith.constant 0 : index
    %3 = vector.load %arg3[%c0_3, %c0_4] : memref<1x128xf32, #tpu.memory_space<vmem>>, vector<1x128xf32>
    %4 = vector.broadcast %3 : vector<1x128xf32> to vector<8x128xf32>
    %5 = arith.addf %2, %4 : vector<8x128xf32>
    %cst_5 = arith.constant 5.000000e-01 : f32
    %6 = vector.broadcast %cst_5 : f32 to vector<8x128xf32>
    %7 = arith.mulf %6, %5 : vector<8x128xf32>
    %8 = math.tanh %7 : vector<8x128xf32>
    %cst_6 = arith.constant 5.000000e-01 : f32
    %9 = vector.broadcast %cst_6 : f32 to vector<8x128xf32>
    %10 = arith.mulf %9, %8 : vector<8x128xf32>
    %cst_7 = arith.constant 5.000000e-01 : f32
    %11 = vector.broadcast %cst_7 : f32 to vector<8x128xf32>
    %12 = arith.addf %10, %11 : vector<8x128xf32>
    %13 = arith.truncf %12 : vector<8x128xf32> to vector<8x128xbf16>
    %c0_8 = arith.constant 0 : index
    %c0_9 = arith.constant 0 : index
    %14 = vector.load %arg4[%c0_8, %c0_9] : memref<128x128xbf16, #tpu.memory_space<vmem>>, vector<128x128xbf16>
    %cst_10 = arith.constant dense<0.000000e+00> : vector<8x128xf32>
    %15 = tpu.matmul %13, %14, %cst_10 {dimension_numbers = #tpu.dot_dimension_numbers<[1], [0], [0], [1], [0, 0, 1, 1], [], []>} : vector<8x128xbf16>, vector<128x128xbf16>, vector<8x128xf32> -> vector<8x128xf32>
    %c0_11 = arith.constant 0 : index
    %c0_12 = arith.constant 0 : index
    %16 = vector.load %arg5[%c0_11, %c0_12] : memref<1x128xf32, #tpu.memory_space<vmem>>, vector<1x128xf32>
    %17 = vector.broadcast %16 : vector<1x128xf32> to vector<8x128xf32>
    %18 = arith.addf %15, %17 : vector<8x128xf32>
    %cst_13 = arith.constant 5.000000e-01 : f32
    %19 = vector.broadcast %cst_13 : f32 to vector<8x128xf32>
    %20 = arith.mulf %19, %18 : vector<8x128xf32>
    %21 = math.tanh %20 : vector<8x128xf32>
    %cst_14 = arith.constant 5.000000e-01 : f32
    %22 = vector.broadcast %cst_14 : f32 to vector<8x128xf32>
    %23 = arith.mulf %22, %21 : vector<8x128xf32>
    %cst_15 = arith.constant 5.000000e-01 : f32
    %24 = vector.broadcast %cst_15 : f32 to vector<8x128xf32>
    %25 = arith.addf %23, %24 : vector<8x128xf32>
    %26 = arith.truncf %25 : vector<8x128xf32> to vector<8x128xbf16>
    %c0_16 = arith.constant 0 : index
    %c0_17 = arith.constant 0 : index
    %27 = vector.load %arg6[%c0_16, %c0_17] : memref<128x128xbf16, #tpu.memory_space<vmem>>, vector<128x128xbf16>
    %cst_18 = arith.constant dense<0.000000e+00> : vector<8x128xf32>
    %28 = tpu.matmul %26, %27, %cst_18 {dimension_numbers = #tpu.dot_dimension_numbers<[1], [0], [0], [1], [0, 0, 1, 1], [], []>} : vector<8x128xbf16>, vector<128x128xbf16>, vector<8x128xf32> -> vector<8x128xf32>
    %c0_19 = arith.constant 0 : index
    %c0_20 = arith.constant 0 : index
    %29 = vector.load %arg7[%c0_19, %c0_20] : memref<1x128xf32, #tpu.memory_space<vmem>>, vector<1x128xf32>
    %30 = vector.broadcast %29 : vector<1x128xf32> to vector<8x128xf32>
    %31 = arith.addf %28, %30 : vector<8x128xf32>
    %cst_21 = arith.constant 5.000000e-01 : f32
    %32 = vector.broadcast %cst_21 : f32 to vector<8x128xf32>
    %33 = arith.mulf %32, %31 : vector<8x128xf32>
    %34 = math.tanh %33 : vector<8x128xf32>
    %cst_22 = arith.constant 5.000000e-01 : f32
    %35 = vector.broadcast %cst_22 : f32 to vector<8x128xf32>
    %36 = arith.mulf %35, %34 : vector<8x128xf32>
    %cst_23 = arith.constant 5.000000e-01 : f32
    %37 = vector.broadcast %cst_23 : f32 to vector<8x128xf32>
    %38 = arith.addf %36, %37 : vector<8x128xf32>
    %39 = arith.truncf %38 : vector<8x128xf32> to vector<8x128xbf16>
    %c0_24 = arith.constant 0 : index
    %c0_25 = arith.constant 0 : index
    %40 = vector.load %arg8[%c0_24, %c0_25] : memref<128x128xbf16, #tpu.memory_space<vmem>>, vector<128x128xbf16>
    %cst_26 = arith.constant dense<0.000000e+00> : vector<8x128xf32>
    %41 = tpu.matmul %39, %40, %cst_26 {dimension_numbers = #tpu.dot_dimension_numbers<[1], [0], [0], [1], [0, 0, 1, 1], [], []>} : vector<8x128xbf16>, vector<128x128xbf16>, vector<8x128xf32> -> vector<8x128xf32>
    %c0_27 = arith.constant 0 : index
    %c0_28 = arith.constant 0 : index
    %42 = vector.load %arg9[%c0_27, %c0_28] : memref<1x128xf32, #tpu.memory_space<vmem>>, vector<1x128xf32>
    %43 = vector.broadcast %42 : vector<1x128xf32> to vector<8x128xf32>
    %44 = arith.addf %41, %43 : vector<8x128xf32>
    %cst_29 = arith.constant 5.000000e-01 : f32
    %45 = vector.broadcast %cst_29 : f32 to vector<8x128xf32>
    %46 = arith.mulf %45, %44 : vector<8x128xf32>
    %47 = math.tanh %46 : vector<8x128xf32>
    %cst_30 = arith.constant 5.000000e-01 : f32
    %48 = vector.broadcast %cst_30 : f32 to vector<8x128xf32>
    %49 = arith.mulf %48, %47 : vector<8x128xf32>
    %cst_31 = arith.constant 5.000000e-01 : f32
    %50 = vector.broadcast %cst_31 : f32 to vector<8x128xf32>
    %51 = arith.addf %49, %50 : vector<8x128xf32>
    %52 = arith.truncf %51 : vector<8x128xf32> to vector<8x128xbf16>
    %c0_32 = arith.constant 0 : index
    %c0_33 = arith.constant 0 : index
    %53 = vector.load %arg10[%c0_32, %c0_33] : memref<128x128xbf16, #tpu.memory_space<vmem>>, vector<128x128xbf16>
    %cst_34 = arith.constant dense<0.000000e+00> : vector<8x128xf32>
    %54 = tpu.matmul %52, %53, %cst_34 {dimension_numbers = #tpu.dot_dimension_numbers<[1], [0], [0], [1], [0, 0, 1, 1], [], []>} : vector<8x128xbf16>, vector<128x128xbf16>, vector<8x128xf32> -> vector<8x128xf32>
    %c0_35 = arith.constant 0 : index
    %c0_36 = arith.constant 0 : index
    %55 = vector.load %arg11[%c0_35, %c0_36] : memref<8x128xf32, #tpu.memory_space<vmem>>, vector<8x128xf32>
    tpu.vector_store %arg11[%c0_35, %c0_36], %54 {strides = array<i32>} : memref<8x128xf32, #tpu.memory_space<vmem>>, vector<8x128xf32>,
    return
  }
  func.func @transform_0(%arg0: i32) -> (i32, i32) {
    %c0_i32 = arith.constant 0 : i32
    %c0_i32_0 = arith.constant 0 : i32
    return %arg0, %c0_i32 : i32, i32
  }
  func.func @transform_1(%arg0: i32) -> (i32, i32) {
    %c0_i32 = arith.constant 0 : i32
    %c0_i32_0 = arith.constant 0 : i32
    %c0_i32_1 = arith.constant 0 : i32
    return %c0_i32, %c0_i32_0 : i32, i32
  }
  func.func @transform_2(%arg0: i32) -> (i32, i32) {
    %c0_i32 = arith.constant 0 : i32
    %c0_i32_0 = arith.constant 0 : i32
    %c0_i32_1 = arith.constant 0 : i32
    return %c0_i32, %c0_i32_0 : i32, i32
  }
  func.func @transform_3(%arg0: i32) -> (i32, i32) {
    %c0_i32 = arith.constant 0 : i32
    %c0_i32_0 = arith.constant 0 : i32
    %c0_i32_1 = arith.constant 0 : i32
    return %c0_i32, %c0_i32_0 : i32, i32
  }
  func.func @transform_4(%arg0: i32) -> (i32, i32) {
    %c0_i32 = arith.constant 0 : i32
    %c0_i32_0 = arith.constant 0 : i32
    %c0_i32_1 = arith.constant 0 : i32
    return %c0_i32, %c0_i32_0 : i32, i32
  }
  func.func @transform_5(%arg0: i32) -> (i32, i32) {
    %c0_i32 = arith.constant 0 : i32
    %c0_i32_0 = arith.constant 0 : i32
    %c0_i32_1 = arith.constant 0 : i32
    return %c0_i32, %c0_i32_0 : i32, i32
  }
  func.func @transform_6(%arg0: i32) -> (i32, i32) {
    %c0_i32 = arith.constant 0 : i32
    %c0_i32_0 = arith.constant 0 : i32
    %c0_i32_1 = arith.constant 0 : i32
    return %c0_i32, %c0_i32_0 : i32, i32
  }
  func.func @transform_7(%arg0: i32) -> (i32, i32) {
    %c0_i32 = arith.constant 0 : i32
    %c0_i32_0 = arith.constant 0 : i32
    %c0_i32_1 = arith.constant 0 : i32
    return %c0_i32, %c0_i32_0 : i32, i32
  }
  func.func @transform_8(%arg0: i32) -> (i32, i32) {
    %c0_i32 = arith.constant 0 : i32
    %c0_i32_0 = arith.constant 0 : i32
    %c0_i32_1 = arith.constant 0 : i32
    return %c0_i32, %c0_i32_0 : i32, i32
  }
  func.func @transform_9(%arg0: i32) -> (i32, i32) {
    %c0_i32 = arith.constant 0 : i32
    %c0_i32_0 = arith.constant 0 : i32
    %c0_i32_1 = arith.constant 0 : i32
    return %c0_i32, %c0_i32_0 : i32, i32
  }
  func.func @transform_10(%arg0: i32) -> (i32, i32) {
    %c0_i32 = arith.constant 0 : i32
    %c0_i32_0 = arith.constant 0 : i32
    return %arg0, %c0_i32 : i32, i32
  }
}

module attributes {stable_mosaic.version = 11 : i64} {
  func.func @kernel(%arg0: i32, %arg1: memref<8x128xbf16, #tpu.memory_space<vmem>>, %arg2: memref<128x128xbf16, #tpu.memory_space<vmem>>, %arg3: memref<1x128xf32, #tpu.memory_space<vmem>>, %arg4: memref<128x128xbf16, #tpu.memory_space<vmem>>, %arg5: memref<1x128xf32, #tpu.memory_space<vmem>>, %arg6: memref<128x128xbf16, #tpu.memory_space<vmem>>, %arg7: memref<1x128xf32, #tpu.memory_space<vmem>>, %arg8: memref<128x128xbf16, #tpu.memory_space<vmem>>, %arg9: memref<1x128xf32, #tpu.memory_space<vmem>>, %arg10: memref<128x128xbf16, #tpu.memory_space<vmem>>, %arg11: memref<8x128xf32, #tpu.memory_space<vmem>>) attributes {dimension_semantics = [#tpu.dimension_semantics<parallel>], iteration_bounds = array<i64: 1>, scalar_prefetch = 0 : i64, scratch_operands = 0 : i64, tpu.core_type = #tpu.core_type<tc>, window_params = [{transform_indices = @transform_0, window_bounds = array<i64: 8, 128>}, {pipeline_mode = #tpu.pipeline_mode<synchronous>, transform_indices = @transform_1, window_bounds = array<i64: 128, 128>}, {pipeline_mode = #tpu.pipeline_mode<synchronous>, transform_indices = @transform_2, window_bounds = array<i64: 1, 128>}, {pipeline_mode = #tpu.pipeline_mode<synchronous>, transform_indices = @transform_3, window_bounds = array<i64: 128, 128>}, {pipeline_mode = #tpu.pipeline_mode<synchronous>, transform_indices = @transform_4, window_bounds = array<i64: 1, 128>}, {pipeline_mode = #tpu.pipeline_mode<synchronous>, transform_indices = @transform_5, window_bounds = array<i64: 128, 128>}, {pipeline_mode = #tpu.pipeline_mode<synchronous>, transform_indices = @transform_6, window_bounds = array<i64: 1, 128>}, {pipeline_mode = #tpu.pipeline_mode<synchronous>, transform_indices = @transform_7, window_bounds = array<i64: 128, 128>}, {pipeline_mode = #tpu.pipeline_mode<synchronous>, transform_indices = @transform_8, window_bounds = array<i64: 1, 128>}, {pipeline_mode = #tpu.pipeline_mode<synchronous>, transform_indices = @transform_9, window_bounds = array<i64: 128, 128>}, {transform_indices = @transform_10, window_bounds = array<i64: 8, 128>}]} {
    %c0 = arith.constant 0 : index
    %c0_0 = arith.constant 0 : index
    %0 = vector.load %arg1[%c0, %c0_0] : memref<8x128xbf16, #tpu.memory_space<vmem>>, vector<8x128xbf16>
    %c0_1 = arith.constant 0 : index
    %c0_2 = arith.constant 0 : index
    %1 = vector.load %arg2[%c0_1, %c0_2] : memref<128x128xbf16, #tpu.memory_space<vmem>>, vector<128x128xbf16>
    %cst = arith.constant dense<0.000000e+00> : vector<8x128xf32>
    %2 = tpu.matmul %0, %1, %cst {dimension_numbers = #tpu.dot_dimension_numbers<[1], [0], [0], [1], [0, 0, 1, 1], [], []>} : vector<8x128xbf16>, vector<128x128xbf16>, vector<8x128xf32> -> vector<8x128xf32>
    %c0_3 = arith.constant 0 : index
    %c0_4 = arith.constant 0 : index
    %3 = vector.load %arg3[%c0_3, %c0_4] : memref<1x128xf32, #tpu.memory_space<vmem>>, vector<1x128xf32>
    %4 = vector.broadcast %3 : vector<1x128xf32> to vector<8x128xf32>
    %5 = arith.addf %2, %4 : vector<8x128xf32>
    %cst_5 = arith.constant 5.000000e-01 : f32
    %6 = vector.broadcast %cst_5 : f32 to vector<8x128xf32>
    %7 = arith.mulf %6, %5 : vector<8x128xf32>
    %8 = math.tanh %7 : vector<8x128xf32>
    %cst_6 = arith.constant 5.000000e-01 : f32
    %9 = vector.broadcast %cst_6 : f32 to vector<8x128xf32>
    %10 = arith.mulf %9, %8 : vector<8x128xf32>
    %cst_7 = arith.constant 5.000000e-01 : f32
    %11 = vector.broadcast %cst_7 : f32 to vector<8x128xf32>
    %12 = arith.addf %10, %11 : vector<8x128xf32>
    %13 = arith.truncf %12 : vector<8x128xf32> to vector<8x128xbf16>
    %c0_8 = arith.constant 0 : index
    %c0_9 = arith.constant 0 : index
    %14 = vector.load %arg4[%c0_8, %c0_9] : memref<128x128xbf16, #tpu.memory_space<vmem>>, vector<128x128xbf16>
    %cst_10 = arith.constant dense<0.000000e+00> : vector<8x128xf32>
    %15 = tpu.matmul %13, %14, %cst_10 {dimension_numbers = #tpu.dot_dimension_numbers<[1], [0], [0], [1], [0, 0, 1, 1], [], []>} : vector<8x128xbf16>, vector<128x128xbf16>, vector<8x128xf32> -> vector<8x128xf32>
    %c0_11 = arith.constant 0 : index
    %c0_12 = arith.constant 0 : index
    %16 = vector.load %arg5[%c0_11, %c0_12] : memref<1x128xf32, #tpu.memory_space<vmem>>, vector<1x128xf32>
    %17 = vector.broadcast %16 : vector<1x128xf32> to vector<8x128xf32>
    %18 = arith.addf %15, %17 : vector<8x128xf32>
    %cst_13 = arith.constant 5.000000e-01 : f32
    %19 = vector.broadcast %cst_13 : f32 to vector<8x128xf32>
    %20 = arith.mulf %19, %18 : vector<8x128xf32>
    %21 = math.tanh %20 : vector<8x128xf32>
    %cst_14 = arith.constant 5.000000e-01 : f32
    %22 = vector.broadcast %cst_14 : f32 to vector<8x128xf32>
    %23 = arith.mulf %22, %21 : vector<8x128xf32>
    %cst_15 = arith.constant 5.000000e-01 : f32
    %24 = vector.broadcast %cst_15 : f32 to vector<8x128xf32>
    %25 = arith.addf %23, %24 : vector<8x128xf32>
    %26 = arith.truncf %25 : vector<8x128xf32> to vector<8x128xbf16>
    %c0_16 = arith.constant 0 : index
    %c0_17 = arith.constant 0 : index
    %27 = vector.load %arg6[%c0_16, %c0_17] : memref<128x128xbf16, #tpu.memory_space<vmem>>, vector<128x128xbf16>
    %cst_18 = arith.constant dense<0.000000e+00> : vector<8x128xf32>
    %28 = tpu.matmul %26, %27, %cst_18 {dimension_numbers = #tpu.dot_dimension_numbers<[1], [0], [0], [1], [0, 0, 1, 1], [], []>} : vector<8x128xbf16>, vector<128x128xbf16>, vector<8x128xf32> -> vector<8x128xf32>
    %c0_19 = arith.constant 0 : index
    %c0_20 = arith.constant 0 : index
    %29 = vector.load %arg7[%c0_19, %c0_20] : memref<1x128xf32, #tpu.memory_space<vmem>>, vector<1x128xf32>
    %30 = vector.broadcast %29 : vector<1x128xf32> to vector<8x128xf32>
    %31 = arith.addf %28, %30 : vector<8x128xf32>
    %cst_21 = arith.constant 5.000000e-01 : f32
    %32 = vector.broadcast %cst_21 : f32 to vector<8x128xf32>
    %33 = arith.mulf %32, %31 : vector<8x128xf32>
    %34 = math.tanh %33 : vector<8x128xf32>
    %cst_22 = arith.constant 5.000000e-01 : f32
    %35 = vector.broadcast %cst_22 : f32 to vector<8x128xf32>
    %36 = arith.mulf %35, %34 : vector<8x128xf32>
    %cst_23 = arith.constant 5.000000e-01 : f32
    %37 = vector.broadcast %cst_23 : f32 to vector<8x128xf32>
    %38 = arith.addf %36, %37 : vector<8x128xf32>
    %39 = arith.truncf %38 : vector<8x128xf32> to vector<8x128xbf16>
    %c0_24 = arith.constant 0 : index
    %c0_25 = arith.constant 0 : index
    %40 = vector.load %arg8[%c0_24, %c0_25] : memref<128x128xbf16, #tpu.memory_space<vmem>>, vector<128x128xbf16>
    %cst_26 = arith.constant dense<0.000000e+00> : vector<8x128xf32>
    %41 = tpu.matmul %39, %40, %cst_26 {dimension_numbers = #tpu.dot_dimension_numbers<[1], [0], [0], [1], [0, 0, 1, 1], [], []>} : vector<8x128xbf16>, vector<128x128xbf16>, vector<8x128xf32> -> vector<8x128xf32>
    %c0_27 = arith.constant 0 : index
    %c0_28 = arith.constant 0 : index
    %42 = vector.load %arg9[%c0_27, %c0_28] : memref<1x128xf32, #tpu.memory_space<vmem>>, vector<1x128xf32>
    %43 = vector.broadcast %42 : vector<1x128xf32> to vector<8x128xf32>
    %44 = arith.addf %41, %43 : vector<8x128xf32>
    %cst_29 = arith.constant 5.000000e-01 : f32
    %45 = vector.broadcast %cst_29 : f32 to vector<8x128xf32>
    %46 = arith.mulf %45, %44 : vector<8x128xf32>
    %47 = math.tanh %46 : vector<8x128xf32>
    %cst_30 = arith.constant 5.000000e-01 : f32
    %48 = vector.broadcast %cst_30 : f32 to vector<8x128xf32>
    %49 = arith.mulf %48, %47 : vector<8x128xf32>
    %cst_31 = arith.constant 5.000000e-01 : f32
    %50 = vector.broadcast %cst_31 : f32 to vector<8x128xf32>
    %51 = arith.addf %49, %50 : vector<8x128xf32>
    %52 = arith.truncf %51 : vector<8x128xf32> to vector<8x128xbf16>
    %c0_32 = arith.constant 0 : index
    %c0_33 = arith.constant 0 : index
    %53 = vector.load %arg10[%c0_32, %c0_33] : memref<128x128xbf16, #tpu.memory_space<vmem>>, vector<128x128xbf16>
    %cst_34 = arith.constant dense<0.000000e+00> : vector<8x128xf32>
    %54 = tpu.matmul %52, %53, %cst_34 {dimension_numbers = #tpu.dot_dimension_numbers<[1], [0], [0], [1], [0, 0, 1, 1], [], []>} : vector<8x128xbf16>, vector<128x128xbf16>, vector<8x128xf32> -> vector<8x128xf32>
    %c0_35 = arith.constant 0 : index
    %c0_36 = arith.constant 0 : index
    %55 = vector.load %arg11[%c0_35, %c0_36] : memref<8x128xf32, #tpu.memory_space<vmem>>, vector<8x128xf32>
    tpu.vector_store %arg11[%c0_35, %c0_36], %54 {strides = array<i32>} : memref<8x128xf32, #tpu.memory_space<vmem>>, vector<8x128xf32>,
    return
  }
  func.func @transform_0(%arg0: i32) -> (i32, i32) {
    %c0_i32 = arith.constant 0 : i32
    %c0_i32_0 = arith.constant 0 : i32
    return %arg0, %c0_i32 : i32, i32
  }
  func.func @transform_1(%arg0: i32) -> (i32, i32) {
    %c0_i32 = arith.constant 0 : i32
    %c0_i32_0 = arith.constant 0 : i32
    %c0_i32_1 = arith.constant 0 : i32
    return %c0_i32, %c0_i32_0 : i32, i32
  }
  func.func @transform_2(%arg0: i32) -> (i32, i32) {
    %c0_i32 = arith.constant 0 : i32
    %c0_i32_0 = arith.constant 0 : i32
    %c0_i32_1 = arith.constant 0 : i32
    return %c0_i32, %c0_i32_0 : i32, i32
  }
  func.func @transform_3(%arg0: i32) -> (i32, i32) {
    %c0_i32 = arith.constant 0 : i32
    %c0_i32_0 = arith.constant 0 : i32
    %c0_i32_1 = arith.constant 0 : i32
    return %c0_i32, %c0_i32_0 : i32, i32
  }
  func.func @transform_4(%arg0: i32) -> (i32, i32) {
    %c0_i32 = arith.constant 0 : i32
    %c0_i32_0 = arith.constant 0 : i32
    %c0_i32_1 = arith.constant 0 : i32
    return %c0_i32, %c0_i32_0 : i32, i32
  }
  func.func @transform_5(%arg0: i32) -> (i32, i32) {
    %c0_i32 = arith.constant 0 : i32
    %c0_i32_0 = arith.constant 0 : i32
    %c0_i32_1 = arith.constant 0 : i32
    return %c0_i32, %c0_i32_0 : i32, i32
  }
  func.func @transform_6(%arg0: i32) -> (i32, i32) {
    %c0_i32 = arith.constant 0 : i32
    %c0_i32_0 = arith.constant 0 : i32
    %c0_i32_1 = arith.constant 0 : i32
    return %c0_i32, %c0_i32_0 : i32, i32
  }
  func.func @transform_7(%arg0: i32) -> (i32, i32) {
    %c0_i32 = arith.constant 0 : i32
    %c0_i32_0 = arith.constant 0 : i32
    %c0_i32_1 = arith.constant 0 : i32
    return %c0_i32, %c0_i32_0 : i32, i32
  }
  func.func @transform_8(%arg0: i32) -> (i32, i32) {
    %c0_i32 = arith.constant 0 : i32
    %c0_i32_0 = arith.constant 0 : i32
    %c0_i32_1 = arith.constant 0 : i32
    return %c0_i32, %c0_i32_0 : i32, i32
  }
  func.func @transform_9(%arg0: i32) -> (i32, i32) {
    %c0_i32 = arith.constant 0 : i32
    %c0_i32_0 = arith.constant 0 : i32
    %c0_i32_1 = arith.constant 0 : i32
    return %c0_i32, %c0_i32_0 : i32, i32
  }
  func.func @transform_10(%arg0: i32) -> (i32, i32) {
    %c0_i32 = arith.constant 0 : i32
    %c0_i32_0 = arith.constant 0 : i32
    return %arg0, %c0_i32 : i32, i32
  }
}

</mosaic_0001>

<bundles_post_ra>
// kernel: deep_ext_pallas.1
= control target key start
LH: loop header
LB: loop body
LE: loop exit
PB: predicated region body
PF: predicated region fallthrough
CT: control target
= control target key end

     0   :  { %15 = vsyncpa [#allocation3], 0  ;;  %s1344_s0 = inlined_call_operand.hbm [shape: bf16[8,128], index: 0, kind: input, shape index: {}]   ;;  %s1345_s1 = inlined_call_operand.hbm [shape: bf16[128,128], index: 1, kind: input, shape index: {}]   ;;  %s1346_s2 = inlined_call_operand.vmem [shape: f32[1,128], index: 2, kind: input, shape index: {}]   ;;  %s1347_s3 = inlined_call_operand.hbm [shape: bf16[128,128], index: 3, kind: input, shape index: {}]   ;;  %s1348_s4 = inlined_call_operand.vmem [shape: f32[1,128], index: 4, kind: input, shape index: {}]   ;;  %s1349_s5 = inlined_call_operand.hbm [shape: bf16[128,128], index: 5, kind: input, shape index: {}]   ;;  %s1350_s6 = inlined_call_operand.vmem [shape: f32[1,128], index: 6, kind: input, shape index: {}]   ;;  %s1351_s7 = inlined_call_operand.hbm [shape: bf16[128,128], index: 7, kind: input, shape index: {}]   ;;  %s1352_s8 = inlined_call_operand.vmem [shape: f32[1,128], index: 8, kind: input, shape index: {}]   ;;  %s1353_s9 = inlined_call_operand.hbm [shape: bf16[128,128], index: 9, kind: input, shape index: {}]   ;;  %s1354_s10 = inlined_call_operand.hbm [shape: f32[8,128], index: 10, kind: output, shape index: {}]  }
   0x1   :  { %16 = vsyncpa [#allocation6], 0 }
   0x2   :  { %17 = vsyncpa [#allocation9], 0 }
   0x3   :  { %18 = vsyncpa [#allocation12], 0 }
   0x4   :  { %19 = vsyncpa [#allocation4], 0  ;;  %s1117_s13 = smov [#allocation5]   ;;  %s953_s17 = scalar_lea.hbm %s1345_s1, 1024 }
   0x5   :  { %s35_s14 = sshll.u32 %s1117_s13, 4  ;;  %p954_p0 = scmp.ne.s32.totalorder %s1345_s1, %s953_s17  ;;  %s36_s14 = int_to_ptr.vmem [resolvable:$true] %s35_s14 }
   0x6   :  { %p957_p1 = scmp.lt.u32.totalorder %s953_s17, %s1345_s1 }
   0x8   :  { %p959_p2 = pnand %p957_p1, %p954_p0 }
   0xa   :  { %962 = shalt.err (!%p959_p2)
}
   0xb   :  { %s963_s22 = scalar_lea.vmem %s36_s14, 1024  ;;  %p968_p4 = scmp.lt.s32.totalorder %s36_s14, %s36_s14 }
   0xc   :  { %p964_p3 = scmp.ne.s32.totalorder %s36_s14, %s963_s22  ;;  %p969_p5 = scmp.lt.s32.totalorder %s963_s22, %s963_s22 }
   0xe   :  { %p970_p6 = por %p969_p5, %p968_p4 }
  0x10   :  { %p971_p7 = pnand %p970_p6, %p964_p3 }
  0x12   :  { %974 = shalt.err (!%p971_p7)
}
  0x13   :  { %s1118_s23 = smov 64   ;;  %s1119_s24 = smov 4  }
  0x14   :  { %41 = dma.hbm_to_vmem [thread:$0]  %s1345_s1, 1024, %s36_s14, [#allocation6], %s1118_s23, %s1118_s23, %s1119_s24  }
  0x15   :  { %s1120_s27 = smov [#allocation8]   ;;  %s1121_s29 = smov [#allocation2]  }
  0x16   :  { %s63_s28 = sshll.u32 %s1120_s27, 4  ;;  %s26_s30 = sshll.u32 %s1121_s29, 4  ;;  %s64_s28 = int_to_ptr.vmem [resolvable:$true] %s63_s28  ;;  %s27_s30 = int_to_ptr.vmem [resolvable:$true] %s26_s30 }
  0x17   :  { %s975_s13 = scalar_lea.hbm %s1349_s5, 1024 }
  0x18   :  { %p976_p8 = scmp.ne.s32.totalorder %s1349_s5, %s975_s13  ;;  %p979_p9 = scmp.lt.u32.totalorder %s975_s13, %s1349_s5 }
  0x1a   :  { %p981_p10 = pnand %p979_p9, %p976_p8 }
  0x1c   :  { %984 = shalt.err (!%p981_p10)
}
  0x1d   :  { %s985_s1 = scalar_lea.vmem %s64_s28, 1024  ;;  %p990_p12 = scmp.lt.s32.totalorder %s64_s28, %s64_s28 }
  0x1e   :  { %p986_p11 = scmp.ne.s32.totalorder %s64_s28, %s985_s1  ;;  %p991_p13 = scmp.lt.s32.totalorder %s985_s1, %s985_s1 }
  0x20   :  { %p992_p0 = por %p991_p13, %p990_p12 }
  0x22   :  { %p993_p1 = pnand %p992_p0, %p986_p11 }
  0x24   :  { %996 = shalt.err (!%p993_p1)
}
  0x25   :  { %69 = dma.hbm_to_vmem [thread:$0]  %s1349_s5, 1024, %s64_s28, [#allocation9], %s1118_s23, %s1118_s23, %s1119_s24  }
  0x26   :  { %s997_s22 = scalar_lea.hbm %s1344_s0, 64 }
  0x27   :  { %p998_p2 = scmp.ne.s32.totalorder %s1344_s0, %s997_s22  ;;  %p1001_p3 = scmp.lt.u32.totalorder %s997_s22, %s1344_s0 }
  0x29   :  { %p1003_p4 = pnand %p1001_p3, %p998_p2 }
  0x2b   :  { %1006 = shalt.err (!%p1003_p4)
}
  0x2c   :  { %s1007_s11 = scalar_lea.vmem %s27_s30, 64  ;;  %p1012_p6 = scmp.lt.s32.totalorder %s27_s30, %s27_s30 }
  0x2d   :  { %p1008_p5 = scmp.ne.s32.totalorder %s27_s30, %s1007_s11  ;;  %p1013_p7 = scmp.lt.s32.totalorder %s1007_s11, %s1007_s11 }
  0x2f   :  { %p1014_p8 = por %p1013_p7, %p1012_p6 }
  0x31   :  { %p1015_p9 = pnand %p1014_p8, %p1008_p5 }
  0x33   :  { %1018 = shalt.err (!%p1015_p9)
}
  0x34   :  { %29 = dma.hbm_to_vmem [thread:$0]  %s1344_s0, 64, %s27_s30, [#allocation3]  }
  0x35   :  { %s1122_s12 = smov [#allocation7]   ;;  %s1123_s15 = smov [#allocation10]  }
  0x36   :  { %s49_s13 = sshll.u32 %s1122_s12, 4  ;;  %s77_s16 = sshll.u32 %s1123_s15, 4  ;;  %s50_s13 = int_to_ptr.vmem [resolvable:$true] %s49_s13  ;;  %s78_s16 = int_to_ptr.vmem [resolvable:$true] %s77_s16 }
  0x37   :  { %s1019_s1 = scalar_lea.hbm %s1347_s3, 1024 }
  0x38   :  { %p1020_p10 = scmp.ne.s32.totalorder %s1347_s3, %s1019_s1  ;;  %p1023_p11 = scmp.lt.u32.totalorder %s1019_s1, %s1347_s3 }
  0x3a   :  { %p1025_p12 = pnand %p1023_p11, %p1020_p10 }
  0x3c   :  { %1028 = shalt.err (!%p1025_p12)
}
  0x3d   :  { %s1029_s0 = scalar_lea.vmem %s50_s13, 1024  ;;  %p1034_p0 = scmp.lt.s32.totalorder %s50_s13, %s50_s13 }
  0x3e   :  { %p1030_p13 = scmp.ne.s32.totalorder %s50_s13, %s1029_s0  ;;  %p1035_p1 = scmp.lt.s32.totalorder %s1029_s0, %s1029_s0 }
  0x40   :  { %p1036_p2 = por %p1035_p1, %p1034_p0 }
  0x42   :  { %p1037_p3 = pnand %p1036_p2, %p1030_p13 }
  0x44   :  { %1040 = shalt.err (!%p1037_p3)
}
  0x45   :  { %55 = dma.hbm_to_vmem [thread:$0]  %s1347_s3, 1024, %s50_s13, [#allocation6], %s1118_s23, %s1118_s23, %s1119_s24  }
  0x46   :  { %s1041_s27 = scalar_lea.hbm %s1351_s7, 1024 }
  0x47   :  { %p1042_p4 = scmp.ne.s32.totalorder %s1351_s7, %s1041_s27  ;;  %p1045_p5 = scmp.lt.u32.totalorder %s1041_s27, %s1351_s7 }
  0x49   :  { %p1047_p6 = pnand %p1045_p5, %p1042_p4 }
  0x4b   :  { %1050 = shalt.err (!%p1047_p6)
}
  0x4c   :  { %s1051_s12 = scalar_lea.vmem %s78_s16, 1024  ;;  %p1056_p8 = scmp.lt.s32.totalorder %s78_s16, %s78_s16 }
  0x4d   :  { %p1052_p7 = scmp.ne.s32.totalorder %s78_s16, %s1051_s12  ;;  %p1057_p9 = scmp.lt.s32.totalorder %s1051_s12, %s1051_s12 }
  0x4f   :  { %p1058_p10 = por %p1057_p9, %p1056_p8 }
  0x51   :  { %p1059_p11 = pnand %p1058_p10, %p1052_p7 }
  0x53   :  { %1062 = shalt.err (!%p1059_p11)
}
  0x54   :  { %83 = dma.hbm_to_vmem [thread:$0]  %s1351_s7, 1024, %s78_s16, [#allocation9], %s1118_s23, %s1118_s23, %s1119_s24  }
  0x55   :  { %s1124_s15 = smov [#allocation11]   ;;  %s1063_s14 = scalar_lea.hbm %s1353_s9, 1024 }
  0x56   :  { %s91_s17 = sshll.u32 %s1124_s15, 4  ;;  %p1064_p12 = scmp.ne.s32.totalorder %s1353_s9, %s1063_s14  ;;  %s92_s17 = int_to_ptr.vmem [resolvable:$true] %s91_s17 }
  0x57   :  { %p1067_p13 = scmp.lt.u32.totalorder %s1063_s14, %s1353_s9 }
  0x59   :  { %p1069_p0 = pnand %p1067_p13, %p1064_p12 }
  0x5b   :  { %1072 = shalt.err (!%p1069_p0)
}
  0x5c   :  { %s1073_s30 = scalar_lea.vmem %s92_s17, 1024  ;;  %p1078_p2 = scmp.lt.s32.totalorder %s92_s17, %s92_s17 }
  0x5d   :  { %p1074_p1 = scmp.ne.s32.totalorder %s92_s17, %s1073_s30  ;;  %p1079_p3 = scmp.lt.s32.totalorder %s1073_s30, %s1073_s30 }
  0x5f   :  { %p1080_p4 = por %p1079_p3, %p1078_p2 }
  0x61   :  { %p1081_p5 = pnand %p1080_p4, %p1074_p1 }
  0x63   :  { %1084 = shalt.err (!%p1081_p5)
}
  0x64   :  { %97 = dma.hbm_to_vmem [thread:$0]  %s1353_s9, 1024, %s92_s17, [#allocation12], %s1118_s23, %s1118_s23, %s1119_s24  }
  0x65   :  { %1107 = dma.done.wait [#allocation3], 64  }
  0x66   :  { %1108 = vsyncadd [#allocation3], 4294967232 }
  0x67   :  { %1109 = dma.done.wait [#allocation6], 2048  }
  0x68   :  { %1110 = vsyncadd [#allocation6], 4294965248 }
  0x69   :  { %1111 = dma.done.wait [#allocation9], 2048  }
  0x6a   :  { %1112 = vsyncadd [#allocation9], 4294965248 }
  0x6b   :  { %1113 = dma.done.wait [#allocation12], 1024  }
  0x6c   :  { %1114 = vsyncadd [#allocation12], 4294966272  ;;  %v1125_v0 = vmov 0.0   ;;  %vm1126_vm0 = vmmov 0   ;;  %v905_v1 = vld [vmem:[#allocation5] sm:$0xff]   ;;  %v906_v2 = vld [vmem:[#allocation5 + $0x8] sm:$0xff]  }
  0x6d   :  { %794 = vmatprep.subr.bf16.mxu0 %v1125_v0  ;;  %810 = vmatprep.mubr.msk.bf16.mxu0 %vm1126_vm0, %v1125_v0  ;;  %v907_v3 = vld [vmem:[#allocation5 + $0x10] sm:$0xff]   ;;  %v913_v4 = vld [vmem:[#allocation7] sm:$0xff]   ;;  %v908_v5 = vld [vmem:[#allocation5 + $0x18] sm:$0xff]   ;;  %s1127_s26 = smov [#allocation13]  }
  0x6e   :  { %814 = vmatprep.subr.bf16.mxu1 %v1125_v0  ;;  %830 = vmatprep.mubr.msk.bf16.mxu1 %vm1126_vm0, %v1125_v0  ;;  %v914_v6 = vld [vmem:[#allocation7 + $0x8] sm:$0xff]   ;;  %v909_v7 = vld [vmem:[#allocation5 + $0x20] sm:$0xff]   ;;  %v915_v8 = vld [vmem:[#allocation7 + $0x10] sm:$0xff]   ;;  %s693_s27 = sshll.u32 %s1127_s26, 4  ;;  %s694_s27 = int_to_ptr.vmem [resolvable:$true] %s693_s27 }
  0x6f   :  { %795 = vmatpush3.bf16.msra.mxu0 %v905_v1  ;;  %815 = vmatpush3.bf16.msra.mxu1 %v913_v4  ;;  %v910_v9 = vld [vmem:[#allocation5 + $0x28] sm:$0xff]   ;;  %v911_v10 = vld [vmem:[#allocation5 + $0x30] sm:$0xff]   ;;  %v912_v11 = vld [vmem:[#allocation5 + $0x38] sm:$0xff]   ;;  %p1090_p7 = scmp.lt.s32.totalorder %s694_s27, %s694_s27 }
  0x70   :  { %796 = vmatprep.subr.bf16.mxu0 %v1125_v0  ;;  %816 = vmatprep.subr.bf16.mxu1 %v1125_v0  ;;  %v117_v12 = vld [vmem:[#allocation2] sm:$0xf]  ;;  %v917_v14 = vld [vmem:[#allocation7 + $0x20] sm:$0xff]   ;;  %v918_v15 = vld [vmem:[#allocation7 + $0x28] sm:$0xff]  }
  0x71   :  { %v916_v13 = vld [vmem:[#allocation7 + $0x18] sm:$0xff]   ;;  %v919_v16 = vld [vmem:[#allocation7 + $0x30] sm:$0xff]   ;;  %v921_v18 = vld [vmem:[#allocation8] sm:$0xff]  }
  0x72   :  { %v920_v17 = vld [vmem:[#allocation7 + $0x38] sm:$0xff]   ;;  %v922_v19 = vld [vmem:[#allocation8 + $0x8] sm:$0xff]   ;;  %v923_v20 = vld [vmem:[#allocation8 + $0x10] sm:$0xff]  }
  0x73   :  { %797 = vmatpush3.bf16.msra.mxu0 %v906_v2  ;;  %817 = vmatpush3.bf16.msra.mxu1 %v914_v6  ;;  %v705_v21 = vld [vmem:[%s1346_s2] ss:$0 sm:$0xff]  ;;  %v925_v33 = vld [vmem:[#allocation8 + $0x20] sm:$0xff]   ;;  %v926_v34 = vld [vmem:[#allocation8 + $0x28] sm:$0xff]  }
  0x74   :  { %798 = vmatprep.subr.bf16.mxu0 %v1125_v0  ;;  %818 = vmatprep.subr.bf16.mxu1 %v1125_v0  ;;  %v924_v32 = vld [vmem:[#allocation8 + $0x18] sm:$0xff]   ;;  %v927_v35 = vld [vmem:[#allocation8 + $0x30] sm:$0xff]   ;;  %v929_v37 = vld [vmem:[#allocation10] sm:$0xff]  }
  0x75   :  { %v928_v36 = vld [vmem:[#allocation8 + $0x38] sm:$0xff]   ;;  %v930_v38 = vld [vmem:[#allocation10 + $0x8] sm:$0xff]   ;;  %v931_v39 = vld [vmem:[#allocation10 + $0x10] sm:$0xff]  }
  0x76   :  { %v714_v40 = vld [vmem:[%s1348_s4] ss:$0 sm:$0xff]  ;;  %v933_v52 = vld [vmem:[#allocation10 + $0x20] sm:$0xff]   ;;  %v934_v53 = vld [vmem:[#allocation10 + $0x28] sm:$0xff]  }
  0x77   :  { %799 = vmatpush3.bf16.msra.mxu0 %v907_v3  ;;  %819 = vmatpush3.bf16.msra.mxu1 %v915_v8  ;;  %v932_v51 = vld [vmem:[#allocation10 + $0x18] sm:$0xff]   ;;  %v935_v54 = vld [vmem:[#allocation10 + $0x30] sm:$0xff]   ;;  %v937_v56 = vld [vmem:[#allocation11] sm:$0xff]  }
  0x78   :  { %800 = vmatprep.subr.bf16.mxu0 %v1125_v0  ;;  %820 = vmatprep.subr.bf16.mxu1 %v1125_v0  ;;  %v936_v55 = vld [vmem:[#allocation10 + $0x38] sm:$0xff]   ;;  %v938_v57 = vld [vmem:[#allocation11 + $0x8] sm:$0xff]   ;;  %v939_v58 = vld [vmem:[#allocation11 + $0x10] sm:$0xff]  }
  0x79   :  { %v723_v59 = vld [vmem:[%s1350_s6] ss:$0 sm:$0xff]  ;;  %v941_v8 = vld [vmem:[#allocation11 + $0x20] sm:$0xff]  }
  0x7b   :  { %801 = vmatpush3.bf16.msra.mxu0 %v908_v5  ;;  %821 = vmatpush3.bf16.msra.mxu1 %v916_v13 }
  0x7c   :  { %802 = vmatprep.subr.bf16.mxu0 %v1125_v0  ;;  %822 = vmatprep.subr.bf16.mxu1 %v1125_v0 }
  0x7f   :  { %803 = vmatpush3.bf16.msra.mxu0 %v909_v7  ;;  %823 = vmatpush3.bf16.msra.mxu1 %v917_v14  ;;  %v940_v7 = vld [vmem:[#allocation11 + $0x18] sm:$0xff]  }
  0x80   :  { %804 = vmatprep.subr.bf16.mxu0 %v1125_v0  ;;  %824 = vmatprep.subr.bf16.mxu1 %v1125_v0 }
  0x83   :  { %805 = vmatpush3.bf16.msra.mxu0 %v910_v9  ;;  %825 = vmatpush3.bf16.msra.mxu1 %v918_v15  ;;  %v942_v9 = vld [vmem:[#allocation11 + $0x28] sm:$0xff]  }
  0x84   :  { %806 = vmatprep.subr.bf16.mxu0 %v1125_v0  ;;  %826 = vmatprep.subr.bf16.mxu1 %v1125_v0 }
  0x87   :  { %807 = vmatpush3.bf16.msra.mxu0 %v911_v10  ;;  %827 = vmatpush3.bf16.msra.mxu1 %v919_v16  ;;  %v943_v10 = vld [vmem:[#allocation11 + $0x30] sm:$0xff]  }
  0x88   :  { %808 = vmatprep.subr.bf16.mxu0 %v1125_v0  ;;  %828 = vmatprep.subr.bf16.mxu1 %v1125_v0 }
  0x8b   :  { %809 = vmatpush3.bf16.msra.mxu0 %v912_v11  ;;  %829 = vmatpush3.bf16.msra.mxu1 %v920_v17  ;;  %v944_v11 = vld [vmem:[#allocation11 + $0x38] sm:$0xff]  }
  0x8c   :  { %834 = vmatprep.subr.bf16.mxu0 %v1125_v0  ;;  %854 = vmatprep.subr.bf16.mxu1 %v1125_v0 }
  0x8e   :  { %811 = vmatmul.mubr.bf16.vlgmr.msra.gmra.mrb[0].mxu0 %v117_v12  ;;  %v732_v12 = vld [vmem:[%s1352_s8] ss:$0 sm:$0xff]  ;;  %s1085_s8 = scalar_lea.vmem %s694_s27, 128 }
  0x8f   :  { %850 = vmatprep.mubr.msk.bf16.mxu0 %vm1126_vm0, %v1125_v0  ;;  %835 = vmatpush3.bf16.msra.mxu0 %v921_v18  ;;  %p1086_p6 = scmp.ne.s32.totalorder %s694_s27, %s1085_s8  ;;  %p1091_p8 = scmp.lt.s32.totalorder %s1085_s8, %s1085_s8 }
  0x90   :  { %836 = vmatprep.subr.bf16.mxu0 %v1125_v0 }
  0x91   :  { %p1092_p9 = por %p1091_p8, %p1090_p7 }
  0x93   :  { %837 = vmatpush3.bf16.msra.mxu0 %v922_v19  ;;  %p1093_p10 = pnand %p1092_p9, %p1086_p6 }
  0x94   :  { %838 = vmatprep.subr.bf16.mxu0 %v1125_v0 }
  0x97   :  { %839 = vmatpush3.bf16.msra.mxu0 %v923_v20 }
  0x98   :  { %840 = vmatprep.subr.bf16.mxu0 %v1125_v0 }
  0x9b   :  { %841 = vmatpush3.bf16.msra.mxu0 %v924_v32 }
  0x9c   :  { %842 = vmatprep.subr.bf16.mxu0 %v1125_v0 }
  0x9f   :  { %843 = vmatpush3.bf16.msra.mxu0 %v925_v33 }
  0xa0   :  { %844 = vmatprep.subr.bf16.mxu0 %v1125_v0 }
  0xa3   :  { %845 = vmatpush3.bf16.msra.mxu0 %v926_v34 }
  0xa4   :  { %846 = vmatprep.subr.bf16.mxu0 %v1125_v0 }
  0xa7   :  { %847 = vmatpush3.bf16.msra.mxu0 %v927_v35 }
  0xa8   :  { %848 = vmatprep.subr.bf16.mxu0 %v1125_v0 }
  0xab   :  { %849 = vmatpush3.bf16.msra.mxu0 %v928_v36 }
  0xac   :  { %874 = vmatprep.subr.bf16.mxu0 %v1125_v0 }
 0x161   :  { %v223_v22 = vpop.f32.mrb[0].mxu0 }
 0x162   :  { %v224_v23 = vadd.f32 %v705_v21, %v223_v22  ;;  %v812_v24 = vpop.f32.mrb[1].mxu0 }
 0x163   :  { %v226_v25 = vpop.f32.mrb[2].mxu0 }
 0x164   :  { %v229_v26 = vmul.f32 0.5, %v224_v23  ;;  %v813_v27 = vpop.f32.mrb[3].mxu0 }
 0x166   :  { %945 = vtanh.f32 %v229_v26 }
 0x170   :  { %v946_v28 = vpop.eup %945 }
 0x171   :  { %v231_v29 = vmul.f32 0.5, %v946_v28 }
 0x173   :  { %v232_v30 = vadd.f32 0.5, %v231_v29 }
 0x175   :  { %v233_v31 = vpack.c.bf16 %v232_v30, %v232_v30 }
 0x177   :  { %831 = vmatmul.mubr.bf16.vlgmr.msra.gmra.mrb[0].mxu1 %v233_v31 }
 0x178   :  { %870 = vmatprep.mubr.msk.bf16.mxu1 %vm1126_vm0, %v1125_v0  ;;  %855 = vmatpush3.bf16.msra.mxu1 %v929_v37 }
 0x179   :  { %856 = vmatprep.subr.bf16.mxu1 %v1125_v0 }
 0x17c   :  { %857 = vmatpush3.bf16.msra.mxu1 %v930_v38 }
 0x17d   :  { %858 = vmatprep.subr.bf16.mxu1 %v1125_v0 }
 0x180   :  { %859 = vmatpush3.bf16.msra.mxu1 %v931_v39 }
 0x181   :  { %860 = vmatprep.subr.bf16.mxu1 %v1125_v0 }
 0x184   :  { %861 = vmatpush3.bf16.msra.mxu1 %v932_v51 }
 0x185   :  { %862 = vmatprep.subr.bf16.mxu1 %v1125_v0 }
 0x188   :  { %863 = vmatpush3.bf16.msra.mxu1 %v933_v52 }
 0x189   :  { %864 = vmatprep.subr.bf16.mxu1 %v1125_v0 }
 0x18c   :  { %865 = vmatpush3.bf16.msra.mxu1 %v934_v53 }
 0x18d   :  { %866 = vmatprep.subr.bf16.mxu1 %v1125_v0 }
 0x190   :  { %867 = vmatpush3.bf16.msra.mxu1 %v935_v54 }
 0x191   :  { %868 = vmatprep.subr.bf16.mxu1 %v1125_v0 }
 0x194   :  { %869 = vmatpush3.bf16.msra.mxu1 %v936_v55 }
 0x24a   :  { %v339_v41 = vpop.f32.mrb[0].mxu1 }
 0x24b   :  { %v340_v42 = vadd.f32 %v714_v40, %v339_v41  ;;  %v832_v43 = vpop.f32.mrb[1].mxu1 }
 0x24c   :  { %v342_v44 = vpop.f32.mrb[2].mxu1 }
 0x24d   :  { %v345_v45 = vmul.f32 0.5, %v340_v42  ;;  %v833_v46 = vpop.f32.mrb[3].mxu1 }
 0x24f   :  { %947 = vtanh.f32 %v345_v45 }
 0x259   :  { %v948_v47 = vpop.eup %947 }
 0x25a   :  { %v347_v48 = vmul.f32 0.5, %v948_v47 }
 0x25c   :  { %v348_v49 = vadd.f32 0.5, %v347_v48 }
 0x25e   :  { %v349_v50 = vpack.c.bf16 %v348_v49, %v348_v49 }
 0x260   :  { %851 = vmatmul.mubr.bf16.vlgmr.msra.gmra.mrb[4].mxu0 %v349_v50 }
 0x261   :  { %890 = vmatprep.mubr.msk.bf16.mxu0 %vm1126_vm0, %v1125_v0  ;;  %875 = vmatpush3.bf16.msra.mxu0 %v937_v56 }
 0x262   :  { %876 = vmatprep.subr.bf16.mxu0 %v1125_v0 }
 0x265   :  { %877 = vmatpush3.bf16.msra.mxu0 %v938_v57 }
 0x266   :  { %878 = vmatprep.subr.bf16.mxu0 %v1125_v0 }
 0x269   :  { %879 = vmatpush3.bf16.msra.mxu0 %v939_v58 }
 0x26a   :  { %880 = vmatprep.subr.bf16.mxu0 %v1125_v0 }
 0x26d   :  { %881 = vmatpush3.bf16.msra.mxu0 %v940_v7 }
 0x26e   :  { %882 = vmatprep.subr.bf16.mxu0 %v1125_v0 }
 0x271   :  { %883 = vmatpush3.bf16.msra.mxu0 %v941_v8 }
 0x272   :  { %884 = vmatprep.subr.bf16.mxu0 %v1125_v0 }
 0x275   :  { %885 = vmatpush3.bf16.msra.mxu0 %v942_v9 }
 0x276   :  { %886 = vmatprep.subr.bf16.mxu0 %v1125_v0 }
 0x279   :  { %887 = vmatpush3.bf16.msra.mxu0 %v943_v10 }
 0x27a   :  { %888 = vmatprep.subr.bf16.mxu0 %v1125_v0 }
 0x27d   :  { %889 = vmatpush3.bf16.msra.mxu0 %v944_v11 }
 0x333   :  { %v455_v60 = vpop.f32.mrb[4].mxu0 }
 0x334   :  { %v456_v61 = vadd.f32 %v723_v59, %v455_v60  ;;  %v852_v62 = vpop.f32.mrb[5].mxu0 }
 0x335   :  { %v458_v63 = vpop.f32.mrb[6].mxu0 }
 0x336   :  { %v461_v1 = vmul.f32 0.5, %v456_v61  ;;  %v853_v2 = vpop.f32.mrb[7].mxu0 }
 0x338   :  { %949 = vtanh.f32 %v461_v1 }
 0x342   :  { %v950_v3 = vpop.eup %949 }
 0x343   :  { %v463_v4 = vmul.f32 0.5, %v950_v3 }
 0x345   :  { %v464_v5 = vadd.f32 0.5, %v463_v4 }
 0x347   :  { %v465_v6 = vpack.c.bf16 %v464_v5, %v464_v5 }
 0x349   :  { %871 = vmatmul.mubr.bf16.vlgmr.msra.gmra.mrb[4].mxu1 %v465_v6 }
 0x41c   :  { %v571_v13 = vpop.f32.mrb[4].mxu1 }
 0x41d   :  { %v572_v14 = vadd.f32 %v732_v12, %v571_v13  ;;  %v872_v15 = vpop.f32.mrb[5].mxu1 }
 0x41e   :  { %v574_v16 = vpop.f32.mrb[6].mxu1 }
 0x41f   :  { %v577_v17 = vmul.f32 0.5, %v572_v14  ;;  %v873_v18 = vpop.f32.mrb[7].mxu1 }
 0x421   :  { %951 = vtanh.f32 %v577_v17 }
 0x42b   :  { %v952_v19 = vpop.eup %951 }
 0x42c   :  { %v579_v20 = vmul.f32 0.5, %v952_v19 }
 0x42e   :  { %v580_v21 = vadd.f32 0.5, %v579_v20 }
 0x430   :  { %v581_v22 = vpack.c.bf16 %v580_v21, %v580_v21 }
 0x432   :  { %891 = vmatmul.mubr.bf16.vlgmr.msra.gmra.mrb[8].mxu0 %v581_v22 }
 0x505   :  { %v680_v0 = vpop.f32.mrb[8].mxu0 }
 0x506   :  { %686 = vst [vmem:[#allocation13] sm:$0xff] %v680_v0  ;;  %v892_v23 = vpop.f32.mrb[9].mxu0 }
 0x507   :  { %v683_v24 = vpop.f32.mrb[10].mxu0 }
 0x508   :  { %1096 = shalt.err (!%p1093_p10)
}
 0x509   :  { %s1097_s5 = scalar_lea.hbm %s1354_s10, 128 }
 0x50a   :  { %p1098_p11 = scmp.ne.s32.totalorder %s1354_s10, %s1097_s5  ;;  %p1101_p12 = scmp.lt.u32.totalorder %s1097_s5, %s1354_s10 }
 0x50c   :  { %p1103_p13 = pnand %p1101_p12, %p1098_p11 }
 0x50e   :  { %1106 = shalt.err (!%p1103_p13)
}
 0x50f   :  { %696 = dma.vmem_to_hbm [thread:$0]  %s694_s27, 128, %s1354_s10, [#allocation4]   ;;  %v893_v25 = vpop.f32.mrb[11].mxu0 }
 0x510   :  { %1115 = dma.done.wait [#allocation4], 128  }
 0x511   :  { %1116 = vsyncadd [#allocation4], 4294967168 }
 0x512   :  { %700 = vsyncpa [#allocation3], 1 }
 0x513   :  { %701 = vsyncpa [#allocation6], 1 }
 0x514   :  { %702 = vsyncpa [#allocation9], 1 }
 0x515   :  { %703 = vsyncpa [#allocation12], 1 }
 0x516   :  { %704 = vsyncpa [#allocation4], 1 }

// kernel: deep_ext_pallas.1
= control target key start
LH: loop header
LB: loop body
LE: loop exit
PB: predicated region body
PF: predicated region fallthrough
CT: control target
= control target key end

     0   :  { %15 = vsyncpa [#allocation3], 0  ;;  %s1344_s0 = inlined_call_operand.hbm [shape: bf16[8,128], index: 0, kind: input, shape index: {}]   ;;  %s1345_s1 = inlined_call_operand.hbm [shape: bf16[128,128], index: 1, kind: input, shape index: {}]   ;;  %s1346_s2 = inlined_call_operand.vmem [shape: f32[1,128], index: 2, kind: input, shape index: {}]   ;;  %s1347_s3 = inlined_call_operand.hbm [shape: bf16[128,128], index: 3, kind: input, shape index: {}]   ;;  %s1348_s4 = inlined_call_operand.vmem [shape: f32[1,128], index: 4, kind: input, shape index: {}]   ;;  %s1349_s5 = inlined_call_operand.hbm [shape: bf16[128,128], index: 5, kind: input, shape index: {}]   ;;  %s1350_s6 = inlined_call_operand.vmem [shape: f32[1,128], index: 6, kind: input, shape index: {}]   ;;  %s1351_s7 = inlined_call_operand.hbm [shape: bf16[128,128], index: 7, kind: input, shape index: {}]   ;;  %s1352_s8 = inlined_call_operand.vmem [shape: f32[1,128], index: 8, kind: input, shape index: {}]   ;;  %s1353_s9 = inlined_call_operand.hbm [shape: bf16[128,128], index: 9, kind: input, shape index: {}]   ;;  %s1354_s10 = inlined_call_operand.hbm [shape: f32[8,128], index: 10, kind: output, shape index: {}]  }
   0x1   :  { %16 = vsyncpa [#allocation6], 0 }
   0x2   :  { %17 = vsyncpa [#allocation9], 0 }
   0x3   :  { %18 = vsyncpa [#allocation12], 0 }
   0x4   :  { %19 = vsyncpa [#allocation4], 0  ;;  %s1117_s13 = smov [#allocation5]   ;;  %s953_s17 = scalar_lea.hbm %s1345_s1, 1024 }
   0x5   :  { %s35_s14 = sshll.u32 %s1117_s13, 4  ;;  %p954_p0 = scmp.ne.s32.totalorder %s1345_s1, %s953_s17  ;;  %s36_s14 = int_to_ptr.vmem [resolvable:$true] %s35_s14 }
   0x6   :  { %p957_p1 = scmp.lt.u32.totalorder %s953_s17, %s1345_s1 }
   0x8   :  { %p959_p2 = pnand %p957_p1, %p954_p0 }
   0xa   :  { %962 = shalt.err (!%p959_p2)
}
   0xb   :  { %s963_s22 = scalar_lea.vmem %s36_s14, 1024  ;;  %p968_p4 = scmp.lt.s32.totalorder %s36_s14, %s36_s14 }
   0xc   :  { %p964_p3 = scmp.ne.s32.totalorder %s36_s14, %s963_s22  ;;  %p969_p5 = scmp.lt.s32.totalorder %s963_s22, %s963_s22 }
   0xe   :  { %p970_p6 = por %p969_p5, %p968_p4 }
  0x10   :  { %p971_p7 = pnand %p970_p6, %p964_p3 }
  0x12   :  { %974 = shalt.err (!%p971_p7)
}
  0x13   :  { %s1118_s23 = smov 64   ;;  %s1119_s24 = smov 4  }
  0x14   :  { %41 = dma.hbm_to_vmem [thread:$0]  %s1345_s1, 1024, %s36_s14, [#allocation6], %s1118_s23, %s1118_s23, %s1119_s24  }
  0x15   :  { %s1120_s27 = smov [#allocation8]   ;;  %s1121_s29 = smov [#allocation2]  }
  0x16   :  { %s63_s28 = sshll.u32 %s1120_s27, 4  ;;  %s26_s30 = sshll.u32 %s1121_s29, 4  ;;  %s64_s28 = int_to_ptr.vmem [resolvable:$true] %s63_s28  ;;  %s27_s30 = int_to_ptr.vmem [resolvable:$true] %s26_s30 }
  0x17   :  { %s975_s13 = scalar_lea.hbm %s1349_s5, 1024 }
  0x18   :  { %p976_p8 = scmp.ne.s32.totalorder %s1349_s5, %s975_s13  ;;  %p979_p9 = scmp.lt.u32.totalorder %s975_s13, %s1349_s5 }
  0x1a   :  { %p981_p10 = pnand %p979_p9, %p976_p8 }
  0x1c   :  { %984 = shalt.err (!%p981_p10)
}
  0x1d   :  { %s985_s1 = scalar_lea.vmem %s64_s28, 1024  ;;  %p990_p12 = scmp.lt.s32.totalorder %s64_s28, %s64_s28 }
  0x1e   :  { %p986_p11 = scmp.ne.s32.totalorder %s64_s28, %s985_s1  ;;  %p991_p13 = scmp.lt.s32.totalorder %s985_s1, %s985_s1 }
  0x20   :  { %p992_p0 = por %p991_p13, %p990_p12 }
  0x22   :  { %p993_p1 = pnand %p992_p0, %p986_p11 }
  0x24   :  { %996 = shalt.err (!%p993_p1)
}
  0x25   :  { %69 = dma.hbm_to_vmem [thread:$0]  %s1349_s5, 1024, %s64_s28, [#allocation9], %s1118_s23, %s1118_s23, %s1119_s24  }
  0x26   :  { %s997_s22 = scalar_lea.hbm %s1344_s0, 64 }
  0x27   :  { %p998_p2 = scmp.ne.s32.totalorder %s1344_s0, %s997_s22  ;;  %p1001_p3 = scmp.lt.u32.totalorder %s997_s22, %s1344_s0 }
  0x29   :  { %p1003_p4 = pnand %p1001_p3, %p998_p2 }
  0x2b   :  { %1006 = shalt.err (!%p1003_p4)
}
  0x2c   :  { %s1007_s11 = scalar_lea.vmem %s27_s30, 64  ;;  %p1012_p6 = scmp.lt.s32.totalorder %s27_s30, %s27_s30 }
  0x2d   :  { %p1008_p5 = scmp.ne.s32.totalorder %s27_s30, %s1007_s11  ;;  %p1013_p7 = scmp.lt.s32.totalorder %s1007_s11, %s1007_s11 }
  0x2f   :  { %p1014_p8 = por %p1013_p7, %p1012_p6 }
  0x31   :  { %p1015_p9 = pnand %p1014_p8, %p1008_p5 }
  0x33   :  { %1018 = shalt.err (!%p1015_p9)
}
  0x34   :  { %29 = dma.hbm_to_vmem [thread:$0]  %s1344_s0, 64, %s27_s30, [#allocation3]  }
  0x35   :  { %s1122_s12 = smov [#allocation7]   ;;  %s1123_s15 = smov [#allocation10]  }
  0x36   :  { %s49_s13 = sshll.u32 %s1122_s12, 4  ;;  %s77_s16 = sshll.u32 %s1123_s15, 4  ;;  %s50_s13 = int_to_ptr.vmem [resolvable:$true] %s49_s13  ;;  %s78_s16 = int_to_ptr.vmem [resolvable:$true] %s77_s16 }
  0x37   :  { %s1019_s1 = scalar_lea.hbm %s1347_s3, 1024 }
  0x38   :  { %p1020_p10 = scmp.ne.s32.totalorder %s1347_s3, %s1019_s1  ;;  %p1023_p11 = scmp.lt.u32.totalorder %s1019_s1, %s1347_s3 }
  0x3a   :  { %p1025_p12 = pnand %p1023_p11, %p1020_p10 }
  0x3c   :  { %1028 = shalt.err (!%p1025_p12)
}
  0x3d   :  { %s1029_s0 = scalar_lea.vmem %s50_s13, 1024  ;;  %p1034_p0 = scmp.lt.s32.totalorder %s50_s13, %s50_s13 }
  0x3e   :  { %p1030_p13 = scmp.ne.s32.totalorder %s50_s13, %s1029_s0  ;;  %p1035_p1 = scmp.lt.s32.totalorder %s1029_s0, %s1029_s0 }
  0x40   :  { %p1036_p2 = por %p1035_p1, %p1034_p0 }
  0x42   :  { %p1037_p3 = pnand %p1036_p2, %p1030_p13 }
  0x44   :  { %1040 = shalt.err (!%p1037_p3)
}
  0x45   :  { %55 = dma.hbm_to_vmem [thread:$0]  %s1347_s3, 1024, %s50_s13, [#allocation6], %s1118_s23, %s1118_s23, %s1119_s24  }
  0x46   :  { %s1041_s27 = scalar_lea.hbm %s1351_s7, 1024 }
  0x47   :  { %p1042_p4 = scmp.ne.s32.totalorder %s1351_s7, %s1041_s27  ;;  %p1045_p5 = scmp.lt.u32.totalorder %s1041_s27, %s1351_s7 }
  0x49   :  { %p1047_p6 = pnand %p1045_p5, %p1042_p4 }
  0x4b   :  { %1050 = shalt.err (!%p1047_p6)
}
  0x4c   :  { %s1051_s12 = scalar_lea.vmem %s78_s16, 1024  ;;  %p1056_p8 = scmp.lt.s32.totalorder %s78_s16, %s78_s16 }
  0x4d   :  { %p1052_p7 = scmp.ne.s32.totalorder %s78_s16, %s1051_s12  ;;  %p1057_p9 = scmp.lt.s32.totalorder %s1051_s12, %s1051_s12 }
  0x4f   :  { %p1058_p10 = por %p1057_p9, %p1056_p8 }
  0x51   :  { %p1059_p11 = pnand %p1058_p10, %p1052_p7 }
  0x53   :  { %1062 = shalt.err (!%p1059_p11)
}
  0x54   :  { %83 = dma.hbm_to_vmem [thread:$0]  %s1351_s7, 1024, %s78_s16, [#allocation9], %s1118_s23, %s1118_s23, %s1119_s24  }
  0x55   :  { %s1124_s15 = smov [#allocation11]   ;;  %s1063_s14 = scalar_lea.hbm %s1353_s9, 1024 }
  0x56   :  { %s91_s17 = sshll.u32 %s1124_s15, 4  ;;  %p1064_p12 = scmp.ne.s32.totalorder %s1353_s9, %s1063_s14  ;;  %s92_s17 = int_to_ptr.vmem [resolvable:$true] %s91_s17 }
  0x57   :  { %p1067_p13 = scmp.lt.u32.totalorder %s1063_s14, %s1353_s9 }
  0x59   :  { %p1069_p0 = pnand %p1067_p13, %p1064_p12 }
  0x5b   :  { %1072 = shalt.err (!%p1069_p0)
}
  0x5c   :  { %s1073_s30 = scalar_lea.vmem %s92_s17, 1024  ;;  %p1078_p2 = scmp.lt.s32.totalorder %s92_s17, %s92_s17 }
  0x5d   :  { %p1074_p1 = scmp.ne.s32.totalorder %s92_s17, %s1073_s30  ;;  %p1079_p3 = scmp.lt.s32.totalorder %s1073_s30, %s1073_s30 }
  0x5f   :  { %p1080_p4 = por %p1079_p3, %p1078_p2 }
  0x61   :  { %p1081_p5 = pnand %p1080_p4, %p1074_p1 }
  0x63   :  { %1084 = shalt.err (!%p1081_p5)
}
  0x64   :  { %97 = dma.hbm_to_vmem [thread:$0]  %s1353_s9, 1024, %s92_s17, [#allocation12], %s1118_s23, %s1118_s23, %s1119_s24  }
  0x65   :  { %1107 = dma.done.wait [#allocation3], 64  }
  0x66   :  { %1108 = vsyncadd [#allocation3], 4294967232 }
  0x67   :  { %1109 = dma.done.wait [#allocation6], 2048  }
  0x68   :  { %1110 = vsyncadd [#allocation6], 4294965248 }
  0x69   :  { %1111 = dma.done.wait [#allocation9], 2048  }
  0x6a   :  { %1112 = vsyncadd [#allocation9], 4294965248 }
  0x6b   :  { %1113 = dma.done.wait [#allocation12], 1024  }
  0x6c   :  { %1114 = vsyncadd [#allocation12], 4294966272  ;;  %v1125_v0 = vmov 0.0   ;;  %vm1126_vm0 = vmmov 0   ;;  %v905_v1 = vld [vmem:[#allocation5] sm:$0xff]   ;;  %v906_v2 = vld [vmem:[#allocation5 + $0x8] sm:$0xff]  }
  0x6d   :  { %794 = vmatprep.subr.bf16.mxu0 %v1125_v0  ;;  %810 = vmatprep.mubr.msk.bf16.mxu0 %vm1126_vm0, %v1125_v0  ;;  %v907_v3 = vld [vmem:[#allocation5 + $0x10] sm:$0xff]   ;;  %v913_v4 = vld [vmem:[#allocation7] sm:$0xff]   ;;  %v908_v5 = vld [vmem:[#allocation5 + $0x18] sm:$0xff]   ;;  %s1127_s26 = smov [#allocation13]  }
  0x6e   :  { %814 = vmatprep.subr.bf16.mxu1 %v1125_v0  ;;  %830 = vmatprep.mubr.msk.bf16.mxu1 %vm1126_vm0, %v1125_v0  ;;  %v914_v6 = vld [vmem:[#allocation7 + $0x8] sm:$0xff]   ;;  %v909_v7 = vld [vmem:[#allocation5 + $0x20] sm:$0xff]   ;;  %v915_v8 = vld [vmem:[#allocation7 + $0x10] sm:$0xff]   ;;  %s693_s27 = sshll.u32 %s1127_s26, 4  ;;  %s694_s27 = int_to_ptr.vmem [resolvable:$true] %s693_s27 }
  0x6f   :  { %795 = vmatpush3.bf16.msra.mxu0 %v905_v1  ;;  %815 = vmatpush3.bf16.msra.mxu1 %v913_v4  ;;  %v910_v9 = vld [vmem:[#allocation5 + $0x28] sm:$0xff]   ;;  %v911_v10 = vld [vmem:[#allocation5 + $0x30] sm:$0xff]   ;;  %v912_v11 = vld [vmem:[#allocation5 + $0x38] sm:$0xff]   ;;  %p1090_p7 = scmp.lt.s32.totalorder %s694_s27, %s694_s27 }
  0x70   :  { %796 = vmatprep.subr.bf16.mxu0 %v1125_v0  ;;  %816 = vmatprep.subr.bf16.mxu1 %v1125_v0  ;;  %v117_v12 = vld [vmem:[#allocation2] sm:$0xf]  ;;  %v917_v14 = vld [vmem:[#allocation7 + $0x20] sm:$0xff]   ;;  %v918_v15 = vld [vmem:[#allocation7 + $0x28] sm:$0xff]  }
  0x71   :  { %v916_v13 = vld [vmem:[#allocation7 + $0x18] sm:$0xff]   ;;  %v919_v16 = vld [vmem:[#allocation7 + $0x30] sm:$0xff]   ;;  %v921_v18 = vld [vmem:[#allocation8] sm:$0xff]  }
  0x72   :  { %v920_v17 = vld [vmem:[#allocation7 + $0x38] sm:$0xff]   ;;  %v922_v19 = vld [vmem:[#allocation8 + $0x8] sm:$0xff]   ;;  %v923_v20 = vld [vmem:[#allocation8 + $0x10] sm:$0xff]  }
  0x73   :  { %797 = vmatpush3.bf16.msra.mxu0 %v906_v2  ;;  %817 = vmatpush3.bf16.msra.mxu1 %v914_v6  ;;  %v705_v21 = vld [vmem:[%s1346_s2] ss:$0 sm:$0xff]  ;;  %v925_v33 = vld [vmem:[#allocation8 + $0x20] sm:$0xff]   ;;  %v926_v34 = vld [vmem:[#allocation8 + $0x28] sm:$0xff]  }
  0x74   :  { %798 = vmatprep.subr.bf16.mxu0 %v1125_v0  ;;  %818 = vmatprep.subr.bf16.mxu1 %v1125_v0  ;;  %v924_v32 = vld [vmem:[#allocation8 + $0x18] sm:$0xff]   ;;  %v927_v35 = vld [vmem:[#allocation8 + $0x30] sm:$0xff]   ;;  %v929_v37 = vld [vmem:[#allocation10] sm:$0xff]  }
  0x75   :  { %v928_v36 = vld [vmem:[#allocation8 + $0x38] sm:$0xff]   ;;  %v930_v38 = vld [vmem:[#allocation10 + $0x8] sm:$0xff]   ;;  %v931_v39 = vld [vmem:[#allocation10 + $0x10] sm:$0xff]  }
  0x76   :  { %v714_v40 = vld [vmem:[%s1348_s4] ss:$0 sm:$0xff]  ;;  %v933_v52 = vld [vmem:[#allocation10 + $0x20] sm:$0xff]   ;;  %v934_v53 = vld [vmem:[#allocation10 + $0x28] sm:$0xff]  }
  0x77   :  { %799 = vmatpush3.bf16.msra.mxu0 %v907_v3  ;;  %819 = vmatpush3.bf16.msra.mxu1 %v915_v8  ;;  %v932_v51 = vld [vmem:[#allocation10 + $0x18] sm:$0xff]   ;;  %v935_v54 = vld [vmem:[#allocation10 + $0x30] sm:$0xff]   ;;  %v937_v56 = vld [vmem:[#allocation11] sm:$0xff]  }
  0x78   :  { %800 = vmatprep.subr.bf16.mxu0 %v1125_v0  ;;  %820 = vmatprep.subr.bf16.mxu1 %v1125_v0  ;;  %v936_v55 = vld [vmem:[#allocation10 + $0x38] sm:$0xff]   ;;  %v938_v57 = vld [vmem:[#allocation11 + $0x8] sm:$0xff]   ;;  %v939_v58 = vld [vmem:[#allocation11 + $0x10] sm:$0xff]  }
  0x79   :  { %v723_v59 = vld [vmem:[%s1350_s6] ss:$0 sm:$0xff]  ;;  %v941_v8 = vld [vmem:[#allocation11 + $0x20] sm:$0xff]  }
  0x7b   :  { %801 = vmatpush3.bf16.msra.mxu0 %v908_v5  ;;  %821 = vmatpush3.bf16.msra.mxu1 %v916_v13 }
  0x7c   :  { %802 = vmatprep.subr.bf16.mxu0 %v1125_v0  ;;  %822 = vmatprep.subr.bf16.mxu1 %v1125_v0 }
  0x7f   :  { %803 = vmatpush3.bf16.msra.mxu0 %v909_v7  ;;  %823 = vmatpush3.bf16.msra.mxu1 %v917_v14  ;;  %v940_v7 = vld [vmem:[#allocation11 + $0x18] sm:$0xff]  }
  0x80   :  { %804 = vmatprep.subr.bf16.mxu0 %v1125_v0  ;;  %824 = vmatprep.subr.bf16.mxu1 %v1125_v0 }
  0x83   :  { %805 = vmatpush3.bf16.msra.mxu0 %v910_v9  ;;  %825 = vmatpush3.bf16.msra.mxu1 %v918_v15  ;;  %v942_v9 = vld [vmem:[#allocation11 + $0x28] sm:$0xff]  }
  0x84   :  { %806 = vmatprep.subr.bf16.mxu0 %v1125_v0  ;;  %826 = vmatprep.subr.bf16.mxu1 %v1125_v0 }
  0x87   :  { %807 = vmatpush3.bf16.msra.mxu0 %v911_v10  ;;  %827 = vmatpush3.bf16.msra.mxu1 %v919_v16  ;;  %v943_v10 = vld [vmem:[#allocation11 + $0x30] sm:$0xff]  }
  0x88   :  { %808 = vmatprep.subr.bf16.mxu0 %v1125_v0  ;;  %828 = vmatprep.subr.bf16.mxu1 %v1125_v0 }
  0x8b   :  { %809 = vmatpush3.bf16.msra.mxu0 %v912_v11  ;;  %829 = vmatpush3.bf16.msra.mxu1 %v920_v17  ;;  %v944_v11 = vld [vmem:[#allocation11 + $0x38] sm:$0xff]  }
  0x8c   :  { %834 = vmatprep.subr.bf16.mxu0 %v1125_v0  ;;  %854 = vmatprep.subr.bf16.mxu1 %v1125_v0 }
  0x8e   :  { %811 = vmatmul.mubr.bf16.vlgmr.msra.gmra.mrb[0].mxu0 %v117_v12  ;;  %v732_v12 = vld [vmem:[%s1352_s8] ss:$0 sm:$0xff]  ;;  %s1085_s8 = scalar_lea.vmem %s694_s27, 128 }
  0x8f   :  { %850 = vmatprep.mubr.msk.bf16.mxu0 %vm1126_vm0, %v1125_v0  ;;  %835 = vmatpush3.bf16.msra.mxu0 %v921_v18  ;;  %p1086_p6 = scmp.ne.s32.totalorder %s694_s27, %s1085_s8  ;;  %p1091_p8 = scmp.lt.s32.totalorder %s1085_s8, %s1085_s8 }
  0x90   :  { %836 = vmatprep.subr.bf16.mxu0 %v1125_v0 }
  0x91   :  { %p1092_p9 = por %p1091_p8, %p1090_p7 }
  0x93   :  { %837 = vmatpush3.bf16.msra.mxu0 %v922_v19  ;;  %p1093_p10 = pnand %p1092_p9, %p1086_p6 }
  0x94   :  { %838 = vmatprep.subr.bf16.mxu0 %v1125_v0 }
  0x97   :  { %839 = vmatpush3.bf16.msra.mxu0 %v923_v20 }
  0x98   :  { %840 = vmatprep.subr.bf16.mxu0 %v1125_v0 }
  0x9b   :  { %841 = vmatpush3.bf16.msra.mxu0 %v924_v32 }
  0x9c   :  { %842 = vmatprep.subr.bf16.mxu0 %v1125_v0 }
  0x9f   :  { %843 = vmatpush3.bf16.msra.mxu0 %v925_v33 }
  0xa0   :  { %844 = vmatprep.subr.bf16.mxu0 %v1125_v0 }
  0xa3   :  { %845 = vmatpush3.bf16.msra.mxu0 %v926_v34 }
  0xa4   :  { %846 = vmatprep.subr.bf16.mxu0 %v1125_v0 }
  0xa7   :  { %847 = vmatpush3.bf16.msra.mxu0 %v927_v35 }
  0xa8   :  { %848 = vmatprep.subr.bf16.mxu0 %v1125_v0 }
  0xab   :  { %849 = vmatpush3.bf16.msra.mxu0 %v928_v36 }
  0xac   :  { %874 = vmatprep.subr.bf16.mxu0 %v1125_v0 }
 0x161   :  { %v223_v22 = vpop.f32.mrb[0].mxu0 }
 0x162   :  { %v224_v23 = vadd.f32 %v705_v21, %v223_v22  ;;  %v812_v24 = vpop.f32.mrb[1].mxu0 }
 0x163   :  { %v226_v25 = vpop.f32.mrb[2].mxu0 }
 0x164   :  { %v229_v26 = vmul.f32 0.5, %v224_v23  ;;  %v813_v27 = vpop.f32.mrb[3].mxu0 }
 0x166   :  { %945 = vtanh.f32 %v229_v26 }
 0x170   :  { %v946_v28 = vpop.eup %945 }
 0x171   :  { %v231_v29 = vmul.f32 0.5, %v946_v28 }
 0x173   :  { %v232_v30 = vadd.f32 0.5, %v231_v29 }
 0x175   :  { %v233_v31 = vpack.c.bf16 %v232_v30, %v232_v30 }
 0x177   :  { %831 = vmatmul.mubr.bf16.vlgmr.msra.gmra.mrb[0].mxu1 %v233_v31 }
 0x178   :  { %870 = vmatprep.mubr.msk.bf16.mxu1 %vm1126_vm0, %v1125_v0  ;;  %855 = vmatpush3.bf16.msra.mxu1 %v929_v37 }
 0x179   :  { %856 = vmatprep.subr.bf16.mxu1 %v1125_v0 }
 0x17c   :  { %857 = vmatpush3.bf16.msra.mxu1 %v930_v38 }
 0x17d   :  { %858 = vmatprep.subr.bf16.mxu1 %v1125_v0 }
 0x180   :  { %859 = vmatpush3.bf16.msra.mxu1 %v931_v39 }
 0x181   :  { %860 = vmatprep.subr.bf16.mxu1 %v1125_v0 }
 0x184   :  { %861 = vmatpush3.bf16.msra.mxu1 %v932_v51 }
 0x185   :  { %862 = vmatprep.subr.bf16.mxu1 %v1125_v0 }
 0x188   :  { %863 = vmatpush3.bf16.msra.mxu1 %v933_v52 }
 0x189   :  { %864 = vmatprep.subr.bf16.mxu1 %v1125_v0 }
 0x18c   :  { %865 = vmatpush3.bf16.msra.mxu1 %v934_v53 }
 0x18d   :  { %866 = vmatprep.subr.bf16.mxu1 %v1125_v0 }
 0x190   :  { %867 = vmatpush3.bf16.msra.mxu1 %v935_v54 }
 0x191   :  { %868 = vmatprep.subr.bf16.mxu1 %v1125_v0 }
 0x194   :  { %869 = vmatpush3.bf16.msra.mxu1 %v936_v55 }
 0x24a   :  { %v339_v41 = vpop.f32.mrb[0].mxu1 }
 0x24b   :  { %v340_v42 = vadd.f32 %v714_v40, %v339_v41  ;;  %v832_v43 = vpop.f32.mrb[1].mxu1 }
 0x24c   :  { %v342_v44 = vpop.f32.mrb[2].mxu1 }
 0x24d   :  { %v345_v45 = vmul.f32 0.5, %v340_v42  ;;  %v833_v46 = vpop.f32.mrb[3].mxu1 }
 0x24f   :  { %947 = vtanh.f32 %v345_v45 }
 0x259   :  { %v948_v47 = vpop.eup %947 }
 0x25a   :  { %v347_v48 = vmul.f32 0.5, %v948_v47 }
 0x25c   :  { %v348_v49 = vadd.f32 0.5, %v347_v48 }
 0x25e   :  { %v349_v50 = vpack.c.bf16 %v348_v49, %v348_v49 }
 0x260   :  { %851 = vmatmul.mubr.bf16.vlgmr.msra.gmra.mrb[4].mxu0 %v349_v50 }
 0x261   :  { %890 = vmatprep.mubr.msk.bf16.mxu0 %vm1126_vm0, %v1125_v0  ;;  %875 = vmatpush3.bf16.msra.mxu0 %v937_v56 }
 0x262   :  { %876 = vmatprep.subr.bf16.mxu0 %v1125_v0 }
 0x265   :  { %877 = vmatpush3.bf16.msra.mxu0 %v938_v57 }
 0x266   :  { %878 = vmatprep.subr.bf16.mxu0 %v1125_v0 }
 0x269   :  { %879 = vmatpush3.bf16.msra.mxu0 %v939_v58 }
 0x26a   :  { %880 = vmatprep.subr.bf16.mxu0 %v1125_v0 }
 0x26d   :  { %881 = vmatpush3.bf16.msra.mxu0 %v940_v7 }
 0x26e   :  { %882 = vmatprep.subr.bf16.mxu0 %v1125_v0 }
 0x271   :  { %883 = vmatpush3.bf16.msra.mxu0 %v941_v8 }
 0x272   :  { %884 = vmatprep.subr.bf16.mxu0 %v1125_v0 }
 0x275   :  { %885 = vmatpush3.bf16.msra.mxu0 %v942_v9 }
 0x276   :  { %886 = vmatprep.subr.bf16.mxu0 %v1125_v0 }
 0x279   :  { %887 = vmatpush3.bf16.msra.mxu0 %v943_v10 }
 0x27a   :  { %888 = vmatprep.subr.bf16.mxu0 %v1125_v0 }
 0x27d   :  { %889 = vmatpush3.bf16.msra.mxu0 %v944_v11 }
 0x333   :  { %v455_v60 = vpop.f32.mrb[4].mxu0 }
 0x334   :  { %v456_v61 = vadd.f32 %v723_v59, %v455_v60  ;;  %v852_v62 = vpop.f32.mrb[5].mxu0 }
 0x335   :  { %v458_v63 = vpop.f32.mrb[6].mxu0 }
 0x336   :  { %v461_v1 = vmul.f32 0.5, %v456_v61  ;;  %v853_v2 = vpop.f32.mrb[7].mxu0 }
 0x338   :  { %949 = vtanh.f32 %v461_v1 }
 0x342   :  { %v950_v3 = vpop.eup %949 }
 0x343   :  { %v463_v4 = vmul.f32 0.5, %v950_v3 }
 0x345   :  { %v464_v5 = vadd.f32 0.5, %v463_v4 }
 0x347   :  { %v465_v6 = vpack.c.bf16 %v464_v5, %v464_v5 }
 0x349   :  { %871 = vmatmul.mubr.bf16.vlgmr.msra.gmra.mrb[4].mxu1 %v465_v6 }
 0x41c   :  { %v571_v13 = vpop.f32.mrb[4].mxu1 }
 0x41d   :  { %v572_v14 = vadd.f32 %v732_v12, %v571_v13  ;;  %v872_v15 = vpop.f32.mrb[5].mxu1 }
 0x41e   :  { %v574_v16 = vpop.f32.mrb[6].mxu1 }
 0x41f   :  { %v577_v17 = vmul.f32 0.5, %v572_v14  ;;  %v873_v18 = vpop.f32.mrb[7].mxu1 }
 0x421   :  { %951 = vtanh.f32 %v577_v17 }
 0x42b   :  { %v952_v19 = vpop.eup %951 }
 0x42c   :  { %v579_v20 = vmul.f32 0.5, %v952_v19 }
 0x42e   :  { %v580_v21 = vadd.f32 0.5, %v579_v20 }
 0x430   :  { %v581_v22 = vpack.c.bf16 %v580_v21, %v580_v21 }
 0x432   :  { %891 = vmatmul.mubr.bf16.vlgmr.msra.gmra.mrb[8].mxu0 %v581_v22 }
 0x505   :  { %v680_v0 = vpop.f32.mrb[8].mxu0 }
 0x506   :  { %686 = vst [vmem:[#allocation13] sm:$0xff] %v680_v0  ;;  %v892_v23 = vpop.f32.mrb[9].mxu0 }
 0x507   :  { %v683_v24 = vpop.f32.mrb[10].mxu0 }
 0x508   :  { %1096 = shalt.err (!%p1093_p10)
}
 0x509   :  { %s1097_s5 = scalar_lea.hbm %s1354_s10, 128 }
 0x50a   :  { %p1098_p11 = scmp.ne.s32.totalorder %s1354_s10, %s1097_s5  ;;  %p1101_p12 = scmp.lt.u32.totalorder %s1097_s5, %s1354_s10 }
 0x50c   :  { %p1103_p13 = pnand %p1101_p12, %p1098_p11 }
 0x50e   :  { %1106 = shalt.err (!%p1103_p13)
}
 0x50f   :  { %696 = dma.vmem_to_hbm [thread:$0]  %s694_s27, 128, %s1354_s10, [#allocation4]   ;;  %v893_v25 = vpop.f32.mrb[11].mxu0 }
 0x510   :  { %1115 = dma.done.wait [#allocation4], 128  }
 0x511   :  { %1116 = vsyncadd [#allocation4], 4294967168 }
 0x512   :  { %700 = vsyncpa [#allocation3], 1 }
 0x513   :  { %701 = vsyncpa [#allocation6], 1 }
 0x514   :  { %702 = vsyncpa [#allocation9], 1 }
 0x515   :  { %703 = vsyncpa [#allocation12], 1 }
 0x516   :  { %704 = vsyncpa [#allocation4], 1 }

</bundles_post_ra>
